<compile_context>
chip_gen: v5e
topology: v5e:2x2
jax: 0.10.0
libtpu: 0.0.40
codegen_flags: <defaults>
</compile_context>

<pallas_src>
import math

import jax
import jax.numpy as jnp
from jax.experimental import pallas as pl
from jax.experimental.pallas import tpu as pltpu

IN_DIM = 1024       # fc1 in_features (hard-coded in the module)
LN_EPS = 1e-5       # nn.LayerNorm default eps


def _layernorm(h, gamma, beta):
    mean = jnp.mean(h, axis=-1, keepdims=True)
    c = h - mean
    var = jnp.mean(c * c, axis=-1, keepdims=True)
    inv = jax.lax.rsqrt(var + LN_EPS)
    return c * inv * gamma + beta


def _tower_kernel(x_ref,
                  w1t_ref, b1_ref, g1_ref, be1_ref,
                  w2t_ref, b2_ref, g2_ref, be2_ref,
                  w3t_ref, b3_ref,
                  o_ref):
    # fc1: [tm, 1024] @ [1024, H]  (weights already transposed in the wrapper)
    h = jnp.dot(x_ref[...], w1t_ref[...],
                preferred_element_type=jnp.float32) + b1_ref[...]
    h = _layernorm(h, g1_ref[...], be1_ref[...])
    # TODO(synk): dropout omitted (eval-mode identity)
    h = jnp.maximum(h, 0.0)

    # fc2: [tm, H] @ [H, H]
    h = jnp.dot(h, w2t_ref[...],
                preferred_element_type=jnp.float32) + b2_ref[...]
    h = _layernorm(h, g2_ref[...], be2_ref[...])
    h = jnp.maximum(h, 0.0)

    # fc3: [tm, H] @ [H, O]
    y = jnp.dot(h, w3t_ref[...],
                preferred_element_type=jnp.float32) + b3_ref[...]
    o_ref[...] = y.astype(o_ref.dtype)


def reaction_tower_forward(x, params, *, tm=128):
    """x: [B, n, a, b] (a*b == 1024) or [B, a, b]. Returns [B, n, out_dim]."""
    if x.ndim == 3:
        x = x[:, None]                       # torch: x.unsqueeze(1)
    B, n = x.shape[0], x.shape[1]
    M = B * n
    x2d = x.reshape(M, IN_DIM)

    H = params["w1"].shape[0]                # hidden_dim
    O = params["w3"].shape[0]                # out_dim

    # One-time layout prep outside the grid loop:
    w1t = params["w1"].T                     # [1024, H]
    w2t = params["w2"].T                     # [H, H]
    w3t = params["w3"].T                     # [H, O]
    b1 = params["b1"].reshape(1, H)
    b2 = params["b2"].reshape(1, H)
    b3 = params["b3"].reshape(1, O)
    g1 = params["g1"].reshape(1, H)
    be1 = params["be1"].reshape(1, H)
    g2 = params["g2"].reshape(1, H)
    be2 = params["be2"].reshape(1, H)

    # Row tiling: multiple of 8 sublanes, no more rows than needed; pad M up.
    tm_eff = min(tm, max(8, ((M + 7) // 8) * 8))
    m_pad = pl.cdiv(M, tm_eff) * tm_eff
    if m_pad != M:
        x2d = jnp.pad(x2d, ((0, m_pad - M), (0, 0)))

    const = lambda i: (0, 0)                 # grid-invariant operands

    out = pl.pallas_call(
        _tower_kernel,
        out_shape=jax.ShapeDtypeStruct((m_pad, O), x2d.dtype),
        grid_spec=pltpu.PrefetchScalarGridSpec(
            num_scalar_prefetch=0,
            grid=(m_pad // tm_eff,),
            in_specs=[
                pl.BlockSpec((tm_eff, IN_DIM), lambda i: (i, 0)),  # x rows
                pl.BlockSpec((IN_DIM, H), const),                  # W1^T (resident)
                pl.BlockSpec((1, H), const),                       # b1
                pl.BlockSpec((1, H), const),                       # ln1 gamma
                pl.BlockSpec((1, H), const),                       # ln1 beta
                pl.BlockSpec((H, H), const),                       # W2^T (resident)
                pl.BlockSpec((1, H), const),                       # b2
                pl.BlockSpec((1, H), const),                       # ln2 gamma
                pl.BlockSpec((1, H), const),                       # ln2 beta
                pl.BlockSpec((H, O), const),                       # W3^T (resident)
                pl.BlockSpec((1, O), const),                       # b3
            ],
            out_specs=pl.BlockSpec((tm_eff, O), lambda i: (i, 0)),
        ),
        compiler_params=pltpu.CompilerParams(
            dimension_semantics=("parallel",)),
    )(x2d, w1t, b1, g1, be1, w2t, b2, g2, be2, w3t, b3)

    return out[:M].reshape(B, n, O)


def _init_linear(key, out_features, in_features, dtype=jnp.float32):
    """nn.Linear default init (uniform +-1/sqrt(fan_in))."""
    kw, kb = jax.random.split(key)
    bound = 1.0 / math.sqrt(in_features)
    w = jax.random.uniform(kw, (out_features, in_features), dtype,
                           minval=-bound, maxval=bound)
    b = jax.random.uniform(kb, (out_features,), dtype,
                           minval=-bound, maxval=bound)
    return w, b


def _ref_forward(x, params):
    if x.ndim == 3:
        x = x[:, None]
    B, n = x.shape[0], x.shape[1]
    h = x.reshape(B * n, IN_DIM)
    h = h @ params["w1"].T + params["b1"]
    h = _layernorm(h, params["g1"], params["be1"])
    h = jnp.maximum(h, 0.0)
    h = h @ params["w2"].T + params["b2"]
    h = _layernorm(h, params["g2"], params["be2"])
    h = jnp.maximum(h, 0.0)
    y = h @ params["w3"].T + params["b3"]
    return y.reshape(B, n, -1)


if __name__ == "__main__":
    hidden_dim = 256
    out_dim = 256
    batch, n = 2, 2                      # x.view(batch*n, 1024) -> 4 rows

    key = jax.random.PRNGKey(0)
    kx, k1, k2, k3 = jax.random.split(key, 4)

    # [B, n, 32, 32]  (32*32 = 1024, matches the module's hard-coded view)
    x = jax.random.normal(kx, (batch, n, 32, 32), dtype=jnp.float32)

    w1, b1 = _init_linear(k1, hidden_dim, IN_DIM)
    w2, b2 = _init_linear(k2, hidden_dim, hidden_dim)
    w3, b3 = _init_linear(k3, out_dim, hidden_dim)
    params = dict(
        w1=w1, b1=b1,
        g1=jnp.ones((hidden_dim,), jnp.float32),
        be1=jnp.zeros((hidden_dim,), jnp.float32),
        w2=w2, b2=b2,
        g2=jnp.ones((hidden_dim,), jnp.float32),
        be2=jnp.zeros((hidden_dim,), jnp.float32),
        w3=w3, b3=b3,
    )

    y = reaction_tower_forward(x, params)
    y = jax.block_until_ready(y)

    y_ref = _ref_forward(x, params)
    assert y.shape == (batch, n, out_dim)
    assert jnp.allclose(y, y_ref, atol=1e-4, rtol=1e-4)

    print("KERNEL_OK")
</pallas_src>

<mosaic_0001>
module attributes {stable_mosaic.version = 11 : i64} {
  func.func @_tower_kernel(%arg0: i32, %arg1: memref<8x1024xf32, #tpu.memory_space<vmem>>, %arg2: memref<1024x256xf32, #tpu.memory_space<vmem>>, %arg3: memref<1x256xf32, #tpu.memory_space<vmem>>, %arg4: memref<1x256xf32, #tpu.memory_space<vmem>>, %arg5: memref<1x256xf32, #tpu.memory_space<vmem>>, %arg6: memref<256x256xf32, #tpu.memory_space<vmem>>, %arg7: memref<1x256xf32, #tpu.memory_space<vmem>>, %arg8: memref<1x256xf32, #tpu.memory_space<vmem>>, %arg9: memref<1x256xf32, #tpu.memory_space<vmem>>, %arg10: memref<256x256xf32, #tpu.memory_space<vmem>>, %arg11: memref<1x256xf32, #tpu.memory_space<vmem>>, %arg12: memref<8x256xf32, #tpu.memory_space<vmem>>) attributes {dimension_semantics = [#tpu.dimension_semantics<parallel>], iteration_bounds = array<i64: 1>, scalar_prefetch = 0 : i64, scratch_operands = 0 : i64, tpu.core_type = #tpu.core_type<tc>, window_params = [{transform_indices = @transform_0, window_bounds = array<i64: 8, 1024>}, {pipeline_mode = #tpu.pipeline_mode<synchronous>, transform_indices = @transform_1, window_bounds = array<i64: 1024, 256>}, {pipeline_mode = #tpu.pipeline_mode<synchronous>, transform_indices = @transform_2, window_bounds = array<i64: 1, 256>}, {pipeline_mode = #tpu.pipeline_mode<synchronous>, transform_indices = @transform_3, window_bounds = array<i64: 1, 256>}, {pipeline_mode = #tpu.pipeline_mode<synchronous>, transform_indices = @transform_4, window_bounds = array<i64: 1, 256>}, {pipeline_mode = #tpu.pipeline_mode<synchronous>, transform_indices = @transform_5, window_bounds = array<i64: 256, 256>}, {pipeline_mode = #tpu.pipeline_mode<synchronous>, transform_indices = @transform_6, window_bounds = array<i64: 1, 256>}, {pipeline_mode = #tpu.pipeline_mode<synchronous>, transform_indices = @transform_7, window_bounds = array<i64: 1, 256>}, {pipeline_mode = #tpu.pipeline_mode<synchronous>, transform_indices = @transform_8, window_bounds = array<i64: 1, 256>}, {pipeline_mode = #tpu.pipeline_mode<synchronous>, transform_indices = @transform_9, window_bounds = array<i64: 256, 256>}, {pipeline_mode = #tpu.pipeline_mode<synchronous>, transform_indices = @transform_10, window_bounds = array<i64: 1, 256>}, {transform_indices = @transform_11, window_bounds = array<i64: 8, 256>}]} {
    %c0 = arith.constant 0 : index
    %c0_0 = arith.constant 0 : index
    %0 = vector.load %arg1[%c0, %c0_0] : memref<8x1024xf32, #tpu.memory_space<vmem>>, vector<8x1024xf32>
    %c0_1 = arith.constant 0 : index
    %c0_2 = arith.constant 0 : index
    %1 = vector.load %arg2[%c0_1, %c0_2] : memref<1024x256xf32, #tpu.memory_space<vmem>>, vector<1024x256xf32>
    %cst = arith.constant dense<0.000000e+00> : vector<8x256xf32>
    %2 = tpu.matmul %0, %1, %cst {dimension_numbers = #tpu.dot_dimension_numbers<[1], [0], [0], [1], [0, 0, 1, 1], [], []>} : vector<8x1024xf32>, vector<1024x256xf32>, vector<8x256xf32> -> vector<8x256xf32>
    %c0_3 = arith.constant 0 : index
    %c0_4 = arith.constant 0 : index
    %3 = vector.load %arg3[%c0_3, %c0_4] : memref<1x256xf32, #tpu.memory_space<vmem>>, vector<1x256xf32>
    %4 = vector.broadcast %3 : vector<1x256xf32> to vector<8x256xf32>
    %5 = arith.addf %2, %4 : vector<8x256xf32>
    %c0_5 = arith.constant 0 : index
    %c0_6 = arith.constant 0 : index
    %6 = vector.load %arg4[%c0_5, %c0_6] : memref<1x256xf32, #tpu.memory_space<vmem>>, vector<1x256xf32>
    %c0_7 = arith.constant 0 : index
    %c0_8 = arith.constant 0 : index
    %7 = vector.load %arg5[%c0_7, %c0_8] : memref<1x256xf32, #tpu.memory_space<vmem>>, vector<1x256xf32>
    %cst_9 = arith.constant dense<0.000000e+00> : vector<8xf32>
    %8 = vector.multi_reduction <add>, %5, %cst_9 [1] : vector<8x256xf32> to vector<8xf32>
    %9 = vector.shape_cast %8 : vector<8xf32> to vector<8x1xf32>
    %cst_10 = arith.constant 2.560000e+02 : f32
    %10 = vector.broadcast %cst_10 : f32 to vector<8x1xf32>
    %11 = arith.divf %9, %10 : vector<8x1xf32>
    %12 = vector.broadcast %11 : vector<8x1xf32> to vector<8x256xf32>
    %13 = arith.subf %5, %12 : vector<8x256xf32>
    %14 = arith.mulf %13, %13 : vector<8x256xf32>
    %cst_11 = arith.constant dense<0.000000e+00> : vector<8xf32>
    %15 = vector.multi_reduction <add>, %14, %cst_11 [1] : vector<8x256xf32> to vector<8xf32>
    %16 = vector.shape_cast %15 : vector<8xf32> to vector<8x1xf32>
    %cst_12 = arith.constant 2.560000e+02 : f32
    %17 = vector.broadcast %cst_12 : f32 to vector<8x1xf32>
    %18 = arith.divf %16, %17 : vector<8x1xf32>
    %cst_13 = arith.constant 9.99999974E-6 : f32
    %19 = vector.broadcast %cst_13 : f32 to vector<8x1xf32>
    %20 = arith.addf %18, %19 : vector<8x1xf32>
    %21 = math.rsqrt %20 : vector<8x1xf32>
    %22 = vector.broadcast %21 : vector<8x1xf32> to vector<8x256xf32>
    %23 = arith.mulf %13, %22 : vector<8x256xf32>
    %24 = vector.broadcast %6 : vector<1x256xf32> to vector<8x256xf32>
    %25 = arith.mulf %23, %24 : vector<8x256xf32>
    %26 = vector.broadcast %7 : vector<1x256xf32> to vector<8x256xf32>
    %27 = arith.addf %25, %26 : vector<8x256xf32>
    %cst_14 = arith.constant 0.000000e+00 : f32
    %28 = vector.broadcast %cst_14 : f32 to vector<8x256xf32>
    %29 = arith.maximumf %27, %28 : vector<8x256xf32>
    %c0_15 = arith.constant 0 : index
    %c0_16 = arith.constant 0 : index
    %30 = vector.load %arg6[%c0_15, %c0_16] : memref<256x256xf32, #tpu.memory_space<vmem>>, vector<256x256xf32>
    %cst_17 = arith.constant dense<0.000000e+00> : vector<8x256xf32>
    %31 = tpu.matmul %29, %30, %cst_17 {dimension_numbers = #tpu.dot_dimension_numbers<[1], [0], [0], [1], [0, 0, 1, 1], [], []>} : vector<8x256xf32>, vector<256x256xf32>, vector<8x256xf32> -> vector<8x256xf32>
    %c0_18 = arith.constant 0 : index
    %c0_19 = arith.constant 0 : index
    %32 = vector.load %arg7[%c0_18, %c0_19] : memref<1x256xf32, #tpu.memory_space<vmem>>, vector<1x256xf32>
    %33 = vector.broadcast %32 : vector<1x256xf32> to vector<8x256xf32>
    %34 = arith.addf %31, %33 : vector<8x256xf32>
    %c0_20 = arith.constant 0 : index
    %c0_21 = arith.constant 0 : index
    %35 = vector.load %arg8[%c0_20, %c0_21] : memref<1x256xf32, #tpu.memory_space<vmem>>, vector<1x256xf32>
    %c0_22 = arith.constant 0 : index
    %c0_23 = arith.constant 0 : index
    %36 = vector.load %arg9[%c0_22, %c0_23] : memref<1x256xf32, #tpu.memory_space<vmem>>, vector<1x256xf32>
    %cst_24 = arith.constant dense<0.000000e+00> : vector<8xf32>
    %37 = vector.multi_reduction <add>, %34, %cst_24 [1] : vector<8x256xf32> to vector<8xf32>
    %38 = vector.shape_cast %37 : vector<8xf32> to vector<8x1xf32>
    %cst_25 = arith.constant 2.560000e+02 : f32
    %39 = vector.broadcast %cst_25 : f32 to vector<8x1xf32>
    %40 = arith.divf %38, %39 : vector<8x1xf32>
    %41 = vector.broadcast %40 : vector<8x1xf32> to vector<8x256xf32>
    %42 = arith.subf %34, %41 : vector<8x256xf32>
    %43 = arith.mulf %42, %42 : vector<8x256xf32>
    %cst_26 = arith.constant dense<0.000000e+00> : vector<8xf32>
    %44 = vector.multi_reduction <add>, %43, %cst_26 [1] : vector<8x256xf32> to vector<8xf32>
    %45 = vector.shape_cast %44 : vector<8xf32> to vector<8x1xf32>
    %cst_27 = arith.constant 2.560000e+02 : f32
    %46 = vector.broadcast %cst_27 : f32 to vector<8x1xf32>
    %47 = arith.divf %45, %46 : vector<8x1xf32>
    %cst_28 = arith.constant 9.99999974E-6 : f32
    %48 = vector.broadcast %cst_28 : f32 to vector<8x1xf32>
    %49 = arith.addf %47, %48 : vector<8x1xf32>
    %50 = math.rsqrt %49 : vector<8x1xf32>
    %51 = vector.broadcast %50 : vector<8x1xf32> to vector<8x256xf32>
    %52 = arith.mulf %42, %51 : vector<8x256xf32>
    %53 = vector.broadcast %35 : vector<1x256xf32> to vector<8x256xf32>
    %54 = arith.mulf %52, %53 : vector<8x256xf32>
    %55 = vector.broadcast %36 : vector<1x256xf32> to vector<8x256xf32>
    %56 = arith.addf %54, %55 : vector<8x256xf32>
    %cst_29 = arith.constant 0.000000e+00 : f32
    %57 = vector.broadcast %cst_29 : f32 to vector<8x256xf32>
    %58 = arith.maximumf %56, %57 : vector<8x256xf32>
    %c0_30 = arith.constant 0 : index
    %c0_31 = arith.constant 0 : index
    %59 = vector.load %arg10[%c0_30, %c0_31] : memref<256x256xf32, #tpu.memory_space<vmem>>, vector<256x256xf32>
    %cst_32 = arith.constant dense<0.000000e+00> : vector<8x256xf32>
    %60 = tpu.matmul %58, %59, %cst_32 {dimension_numbers = #tpu.dot_dimension_numbers<[1], [0], [0], [1], [0, 0, 1, 1], [], []>} : vector<8x256xf32>, vector<256x256xf32>, vector<8x256xf32> -> vector<8x256xf32>
    %c0_33 = arith.constant 0 : index
    %c0_34 = arith.constant 0 : index
    %61 = vector.load %arg11[%c0_33, %c0_34] : memref<1x256xf32, #tpu.memory_space<vmem>>, vector<1x256xf32>
    %62 = vector.broadcast %61 : vector<1x256xf32> to vector<8x256xf32>
    %63 = arith.addf %60, %62 : vector<8x256xf32>
    %c0_35 = arith.constant 0 : index
    %c0_36 = arith.constant 0 : index
    %64 = vector.load %arg12[%c0_35, %c0_36] : memref<8x256xf32, #tpu.memory_space<vmem>>, vector<8x256xf32>
    tpu.vector_store %arg12[%c0_35, %c0_36], %63 {strides = array<i32>} : memref<8x256xf32, #tpu.memory_space<vmem>>, vector<8x256xf32>,
    return
  }
  func.func @transform_0(%arg0: i32) -> (i32, i32) {
    %c0_i32 = arith.constant 0 : i32
    %c0_i32_0 = arith.constant 0 : i32
    return %arg0, %c0_i32 : i32, i32
  }
  func.func @transform_1(%arg0: i32) -> (i32, i32) {
    %c0_i32 = arith.constant 0 : i32
    %c0_i32_0 = arith.constant 0 : i32
    %c0_i32_1 = arith.constant 0 : i32
    return %c0_i32, %c0_i32_0 : i32, i32
  }
  func.func @transform_2(%arg0: i32) -> (i32, i32) {
    %c0_i32 = arith.constant 0 : i32
    %c0_i32_0 = arith.constant 0 : i32
    %c0_i32_1 = arith.constant 0 : i32
    return %c0_i32, %c0_i32_0 : i32, i32
  }
  func.func @transform_3(%arg0: i32) -> (i32, i32) {
    %c0_i32 = arith.constant 0 : i32
    %c0_i32_0 = arith.constant 0 : i32
    %c0_i32_1 = arith.constant 0 : i32
    return %c0_i32, %c0_i32_0 : i32, i32
  }
  func.func @transform_4(%arg0: i32) -> (i32, i32) {
    %c0_i32 = arith.constant 0 : i32
    %c0_i32_0 = arith.constant 0 : i32
    %c0_i32_1 = arith.constant 0 : i32
    return %c0_i32, %c0_i32_0 : i32, i32
  }
  func.func @transform_5(%arg0: i32) -> (i32, i32) {
    %c0_i32 = arith.constant 0 : i32
    %c0_i32_0 = arith.constant 0 : i32
    %c0_i32_1 = arith.constant 0 : i32
    return %c0_i32, %c0_i32_0 : i32, i32
  }
  func.func @transform_6(%arg0: i32) -> (i32, i32) {
    %c0_i32 = arith.constant 0 : i32
    %c0_i32_0 = arith.constant 0 : i32
    %c0_i32_1 = arith.constant 0 : i32
    return %c0_i32, %c0_i32_0 : i32, i32
  }
  func.func @transform_7(%arg0: i32) -> (i32, i32) {
    %c0_i32 = arith.constant 0 : i32
    %c0_i32_0 = arith.constant 0 : i32
    %c0_i32_1 = arith.constant 0 : i32
    return %c0_i32, %c0_i32_0 : i32, i32
  }
  func.func @transform_8(%arg0: i32) -> (i32, i32) {
    %c0_i32 = arith.constant 0 : i32
    %c0_i32_0 = arith.constant 0 : i32
    %c0_i32_1 = arith.constant 0 : i32
    return %c0_i32, %c0_i32_0 : i32, i32
  }
  func.func @transform_9(%arg0: i32) -> (i32, i32) {
    %c0_i32 = arith.constant 0 : i32
    %c0_i32_0 = arith.constant 0 : i32
    %c0_i32_1 = arith.constant 0 : i32
    return %c0_i32, %c0_i32_0 : i32, i32
  }
  func.func @transform_10(%arg0: i32) -> (i32, i32) {
    %c0_i32 = arith.constant 0 : i32
    %c0_i32_0 = arith.constant 0 : i32
    %c0_i32_1 = arith.constant 0 : i32
    return %c0_i32, %c0_i32_0 : i32, i32
  }
  func.func @transform_11(%arg0: i32) -> (i32, i32) {
    %c0_i32 = arith.constant 0 : i32
    %c0_i32_0 = arith.constant 0 : i32
    return %arg0, %c0_i32 : i32, i32
  }
}

</mosaic_0001>

<bundles_post_ra>
// kernel: tpu_custom_call.1
= control target key start
LH: loop header
LB: loop body
LE: loop exit
PB: predicated region body
PF: predicated region fallthrough
CT: control target
= control target key end

     0   :  { %16 = vsyncpa [#allocation3], 0  ;;  %s1538_s0 = inlined_call_operand.hbm [shape: f32[8,1024], index: 0, kind: input, shape index: {}]   ;;  %s1539_s1 = inlined_call_operand.hbm [shape: f32[1024,256], index: 1, kind: input, shape index: {}]   ;;  %s1540_s2 = inlined_call_operand.hbm [shape: f32[1,256], index: 2, kind: input, shape index: {}]   ;;  %s1541_s3 = inlined_call_operand.vmem [shape: f32[1,256], index: 3, kind: input, shape index: {}]   ;;  %s1542_s4 = inlined_call_operand.hbm [shape: f32[1,256], index: 4, kind: input, shape index: {}]   ;;  %s1543_s5 = inlined_call_operand.hbm [shape: f32[256,256], index: 5, kind: input, shape index: {}]   ;;  %s1544_s6 = inlined_call_operand.vmem [shape: f32[1,256], index: 6, kind: input, shape index: {}]   ;;  %s1545_s7 = inlined_call_operand.vmem [shape: f32[1,256], index: 7, kind: input, shape index: {}]   ;;  %s1546_s8 = inlined_call_operand.hbm [shape: f32[1,256], index: 8, kind: input, shape index: {}]   ;;  %s1547_s9 = inlined_call_operand.hbm [shape: f32[256,256], index: 9, kind: input, shape index: {}]   ;;  %s1548_s10 = inlined_call_operand.vmem [shape: f32[1,256], index: 10, kind: input, shape index: {}]   ;;  %s1549_s11 = inlined_call_operand.hbm [shape: f32[8,256], index: 11, kind: output, shape index: {}]  }
   0x1   :  { %17 = vsyncpa [#allocation6], 0 }
   0x2   :  { %18 = vsyncpa [#allocation9], 0 }
   0x3   :  { %19 = vsyncpa [#allocation12], 0  ;;  %s36_s19 = sshll.u32 %s1539_s1, 4  ;;  %s37_s19 = int_to_ptr.hbm [resolvable:$true] %s36_s19 }
   0x4   :  { %20 = vsyncpa [#allocation4], 0  ;;  %s1364_s20 = smov [#allocation5]   ;;  %s63_s24 = sshll.u32 %s1542_s4, 4  ;;  %s64_s24 = int_to_ptr.hbm [resolvable:$true] %s63_s24 }
   0x5   :  { %s38_s21 = sshll.u32 %s1364_s20, 4  ;;  %s1365_s25 = smov 256   ;;  %s39_s21 = int_to_ptr.vmem [resolvable:$true] %s38_s21 }
   0x6   :  { %s1366_s26 = smov 16   ;;  %s1367_s27 = smov [#allocation8]  }
   0x7   :  { %44 = dma.hbm_to_vmem [thread:$0]  %s37_s19, 32768, %s39_s21, [#allocation6], %s1365_s25, %s1365_s25, %s1366_s26  }
   0x8   :  { %s65_s28 = sshll.u32 %s1367_s27, 4  ;;  %s91_s30 = sshll.u32 %s1546_s8, 4  ;;  %s66_s28 = int_to_ptr.vmem [resolvable:$true] %s65_s28  ;;  %s92_s30 = int_to_ptr.hbm [resolvable:$true] %s91_s30 }
   0x9   :  { %68 = dma.hbm_to_vmem [thread:$0]  %s64_s24, 32, %s66_s28, [#allocation9]  }
   0xa   :  { %s26_s4 = sshll.u32 %s1538_s0, 4  ;;  %s1368_s14 = smov [#allocation11]   ;;  %s27_s4 = int_to_ptr.hbm [resolvable:$true] %s26_s4 }
   0xb   :  { %s93_s15 = sshll.u32 %s1368_s14, 4  ;;  %s1369_s16 = smov [#allocation2]   ;;  %s94_s15 = int_to_ptr.vmem [resolvable:$true] %s93_s15 }
   0xc   :  { %96 = dma.hbm_to_vmem [thread:$0]  %s92_s30, 32, %s94_s15, [#allocation12]  }
   0xd   :  { %s28_s17 = sshll.u32 %s1369_s16, 4  ;;  %s50_s20 = sshll.u32 %s1540_s2, 4  ;;  %s29_s17 = int_to_ptr.vmem [resolvable:$true] %s28_s17  ;;  %s51_s20 = int_to_ptr.hbm [resolvable:$true] %s50_s20 }
   0xe   :  { %31 = dma.hbm_to_vmem [thread:$0]  %s27_s4, 1024, %s29_s17, [#allocation3]  }
   0xf   :  { %s73_s22 = sshll.u32 %s1543_s5, 4  ;;  %s1370_s23 = smov [#allocation7]   ;;  %s74_s22 = int_to_ptr.hbm [resolvable:$true] %s73_s22 }
  0x10   :  { %s52_s0 = sshll.u32 %s1370_s23, 4  ;;  %s1371_s24 = smov [#allocation10]   ;;  %s53_s0 = int_to_ptr.vmem [resolvable:$true] %s52_s0 }
  0x11   :  { %55 = dma.hbm_to_vmem [thread:$0]  %s51_s20, 32, %s53_s0, [#allocation6]  }
  0x12   :  { %s75_s27 = sshll.u32 %s1371_s24, 4  ;;  %s101_s1 = sshll.u32 %s1547_s9, 4  ;;  %s76_s27 = int_to_ptr.vmem [resolvable:$true] %s75_s27  ;;  %s102_s1 = int_to_ptr.hbm [resolvable:$true] %s101_s1 }
  0x13   :  { %81 = dma.hbm_to_vmem [thread:$0]  %s74_s22, 8192, %s76_s27, [#allocation9], %s1365_s25, %s1365_s25, %s1366_s26  }
  0x14   :  { %s1372_s2 = smov [#allocation13]  }
  0x15   :  { %s103_s30 = sshll.u32 %s1372_s2, 4  ;;  %s104_s30 = int_to_ptr.vmem [resolvable:$true] %s103_s30 }
  0x16   :  { %109 = dma.hbm_to_vmem [thread:$0]  %s102_s1, 8192, %s104_s30, [#allocation12], %s1365_s25, %s1365_s25, %s1366_s26  }
  0x17   :  { %1354 = dma.done.wait [#allocation3], 1024  }
  0x18   :  { %1355 = vsyncadd [#allocation3], 4294966272 }
  0x19   :  { %1356 = dma.done.wait [#allocation6], 32800  }
  0x1a   :  { %1357 = vsyncadd [#allocation6], 4294934496 }
  0x1b   :  { %1358 = dma.done.wait [#allocation9], 8224  }
  0x1c   :  { %1359 = vsyncadd [#allocation9], 4294959072 }
  0x1d   :  { %1360 = dma.done.wait [#allocation12], 8224  }
  0x1e   :  { %1361 = vsyncadd [#allocation12], 4294959072  ;;  %v242_v0 = vld [vmem:[#allocation5 + $0x2f0] sm:$0xff]  ;;  %v240_v2 = vld [vmem:[#allocation5 + $0x2e0] sm:$0xff]  ;;  %s1374_s13 = smov [#allocation14]   ;;  %s1132_s16 = sshll.u32 %s1549_s11, 4  ;;  %s1133_s16 = int_to_ptr.hbm [resolvable:$true] %s1132_s16 }
  0x1f   :  { %v178_v1 = vld [vmem:[#allocation5 + $0xf0] sm:$0xff]  ;;  %450 = vmatpush.msra.mxu2 %v242_v0  ;;  %v176_v4 = vld [vmem:[#allocation5 + $0xe0] sm:$0xff]  ;;  %s1130_s4 = sshll.u32 %s1374_s13, 4  ;;  %s1131_s4 = int_to_ptr.vmem [resolvable:$true] %s1130_s4 }
  0x20   :  { %410 = vmatpush.msra.mxu0 %v178_v1  ;;  %v274_v3 = vld [vmem:[#allocation5 + $0x3f0] sm:$0xff]  ;;  %v272_v7 = vld [vmem:[#allocation5 + $0x3e0] sm:$0xff] }
  0x21   :  { %v210_v5 = vld [vmem:[#allocation5 + $0x1f0] sm:$0xff]  ;;  %470 = vmatpush.msra.mxu3 %v274_v3  ;;  %451 = vmatpush.msra.mxu2 %v240_v2  ;;  %v208_v9 = vld [vmem:[#allocation5 + $0x1e0] sm:$0xff] }
  0x22   :  { %430 = vmatpush.msra.mxu1 %v210_v5  ;;  %v238_v6 = vld [vmem:[#allocation5 + $0x2d0] sm:$0xff]  ;;  %411 = vmatpush.msra.mxu0 %v176_v4  ;;  %v236_v11 = vld [vmem:[#allocation5 + $0x2c0] sm:$0xff] }
  0x23   :  { %v174_v8 = vld [vmem:[#allocation5 + $0xd0] sm:$0xff]  ;;  %471 = vmatpush.msra.mxu3 %v272_v7  ;;  %v172_v12 = vld [vmem:[#allocation5 + $0xc0] sm:$0xff]  ;;  %452 = vmatpush.msra.mxu2 %v238_v6 }
  0x24   :  { %v270_v10 = vld [vmem:[#allocation5 + $0x3d0] sm:$0xff]  ;;  %431 = vmatpush.msra.mxu1 %v208_v9  ;;  %412 = vmatpush.msra.mxu0 %v174_v8  ;;  %v268_v14 = vld [vmem:[#allocation5 + $0x3c0] sm:$0xff] }
  0x25   :  { %v206_v13 = vld [vmem:[#allocation5 + $0x1d0] sm:$0xff]  ;;  %v204_v15 = vld [vmem:[#allocation5 + $0x1c0] sm:$0xff]  ;;  %472 = vmatpush.msra.mxu3 %v270_v10  ;;  %453 = vmatpush.msra.mxu2 %v236_v11 }
  0x26   :  { %432 = vmatpush.msra.mxu1 %v206_v13  ;;  %v234_v16 = vld [vmem:[#allocation5 + $0x2b0] sm:$0xff]  ;;  %413 = vmatpush.msra.mxu0 %v172_v12  ;;  %v232_v20 = vld [vmem:[#allocation5 + $0x2a0] sm:$0xff] }
  0x27   :  { %v170_v17 = vld [vmem:[#allocation5 + $0xb0] sm:$0xff]  ;;  %473 = vmatpush.msra.mxu3 %v268_v14  ;;  %v168_v21 = vld [vmem:[#allocation5 + $0xa0] sm:$0xff]  ;;  %454 = vmatpush.msra.mxu2 %v234_v16 }
  0x28   :  { %v266_v18 = vld [vmem:[#allocation5 + $0x3b0] sm:$0xff]  ;;  %433 = vmatpush.msra.mxu1 %v204_v15  ;;  %414 = vmatpush.msra.mxu0 %v170_v17  ;;  %v264_v22 = vld [vmem:[#allocation5 + $0x3a0] sm:$0xff] }
  0x29   :  { %v202_v19 = vld [vmem:[#allocation5 + $0x1b0] sm:$0xff]  ;;  %v200_v23 = vld [vmem:[#allocation5 + $0x1a0] sm:$0xff]  ;;  %474 = vmatpush.msra.mxu3 %v266_v18  ;;  %455 = vmatpush.msra.mxu2 %v232_v20 }
  0x2a   :  { %434 = vmatpush.msra.mxu1 %v202_v19  ;;  %v230_v24 = vld [vmem:[#allocation5 + $0x290] sm:$0xff]  ;;  %415 = vmatpush.msra.mxu0 %v168_v21  ;;  %v228_v28 = vld [vmem:[#allocation5 + $0x280] sm:$0xff] }
  0x2b   :  { %v166_v25 = vld [vmem:[#allocation5 + $0x90] sm:$0xff]  ;;  %475 = vmatpush.msra.mxu3 %v264_v22  ;;  %v164_v29 = vld [vmem:[#allocation5 + $0x80] sm:$0xff]  ;;  %456 = vmatpush.msra.mxu2 %v230_v24 }
  0x2c   :  { %v262_v26 = vld [vmem:[#allocation5 + $0x390] sm:$0xff]  ;;  %435 = vmatpush.msra.mxu1 %v200_v23  ;;  %416 = vmatpush.msra.mxu0 %v166_v25  ;;  %v260_v30 = vld [vmem:[#allocation5 + $0x380] sm:$0xff] }
  0x2d   :  { %v198_v27 = vld [vmem:[#allocation5 + $0x190] sm:$0xff]  ;;  %v196_v31 = vld [vmem:[#allocation5 + $0x180] sm:$0xff]  ;;  %476 = vmatpush.msra.mxu3 %v262_v26  ;;  %457 = vmatpush.msra.mxu2 %v228_v28 }
  0x2e   :  { %436 = vmatpush.msra.mxu1 %v198_v27  ;;  %v226_v32 = vld [vmem:[#allocation5 + $0x270] sm:$0xff]  ;;  %417 = vmatpush.msra.mxu0 %v164_v29  ;;  %v224_v36 = vld [vmem:[#allocation5 + $0x260] sm:$0xff] }
  0x2f   :  { %v162_v33 = vld [vmem:[#allocation5 + $0x70] sm:$0xff]  ;;  %477 = vmatpush.msra.mxu3 %v260_v30  ;;  %v160_v37 = vld [vmem:[#allocation5 + $0x60] sm:$0xff]  ;;  %458 = vmatpush.msra.mxu2 %v226_v32 }
  0x30   :  { %v258_v34 = vld [vmem:[#allocation5 + $0x370] sm:$0xff]  ;;  %437 = vmatpush.msra.mxu1 %v196_v31  ;;  %418 = vmatpush.msra.mxu0 %v162_v33  ;;  %v256_v38 = vld [vmem:[#allocation5 + $0x360] sm:$0xff] }
  0x31   :  { %v194_v35 = vld [vmem:[#allocation5 + $0x170] sm:$0xff]  ;;  %v192_v39 = vld [vmem:[#allocation5 + $0x160] sm:$0xff]  ;;  %478 = vmatpush.msra.mxu3 %v258_v34  ;;  %459 = vmatpush.msra.mxu2 %v224_v36 }
  0x32   :  { %438 = vmatpush.msra.mxu1 %v194_v35  ;;  %v222_v40 = vld [vmem:[#allocation5 + $0x250] sm:$0xff]  ;;  %419 = vmatpush.msra.mxu0 %v160_v37  ;;  %v220_v44 = vld [vmem:[#allocation5 + $0x240] sm:$0xff] }
  0x33   :  { %v158_v41 = vld [vmem:[#allocation5 + $0x50] sm:$0xff]  ;;  %479 = vmatpush.msra.mxu3 %v256_v38  ;;  %v156_v45 = vld [vmem:[#allocation5 + $0x40] sm:$0xff]  ;;  %460 = vmatpush.msra.mxu2 %v222_v40 }
  0x34   :  { %v254_v42 = vld [vmem:[#allocation5 + $0x350] sm:$0xff]  ;;  %439 = vmatpush.msra.mxu1 %v192_v39  ;;  %420 = vmatpush.msra.mxu0 %v158_v41  ;;  %v252_v46 = vld [vmem:[#allocation5 + $0x340] sm:$0xff] }
  0x35   :  { %v190_v43 = vld [vmem:[#allocation5 + $0x150] sm:$0xff]  ;;  %v188_v47 = vld [vmem:[#allocation5 + $0x140] sm:$0xff]  ;;  %480 = vmatpush.msra.mxu3 %v254_v42  ;;  %461 = vmatpush.msra.mxu2 %v220_v44 }
  0x36   :  { %440 = vmatpush.msra.mxu1 %v190_v43  ;;  %v218_v48 = vld [vmem:[#allocation5 + $0x230] sm:$0xff]  ;;  %421 = vmatpush.msra.mxu0 %v156_v45  ;;  %v216_v52 = vld [vmem:[#allocation5 + $0x220] sm:$0xff] }
  0x37   :  { %v154_v49 = vld [vmem:[#allocation5 + $0x30] sm:$0xff]  ;;  %481 = vmatpush.msra.mxu3 %v252_v46  ;;  %v152_v53 = vld [vmem:[#allocation5 + $0x20] sm:$0xff]  ;;  %462 = vmatpush.msra.mxu2 %v218_v48 }
  0x38   :  { %v250_v50 = vld [vmem:[#allocation5 + $0x330] sm:$0xff]  ;;  %441 = vmatpush.msra.mxu1 %v188_v47  ;;  %422 = vmatpush.msra.mxu0 %v154_v49  ;;  %v248_v54 = vld [vmem:[#allocation5 + $0x320] sm:$0xff] }
  0x39   :  { %v186_v51 = vld [vmem:[#allocation5 + $0x130] sm:$0xff]  ;;  %v184_v55 = vld [vmem:[#allocation5 + $0x120] sm:$0xff]  ;;  %482 = vmatpush.msra.mxu3 %v250_v50  ;;  %463 = vmatpush.msra.mxu2 %v216_v52 }
  0x3a   :  { %442 = vmatpush.msra.mxu1 %v186_v51  ;;  %v214_v56 = vld [vmem:[#allocation5 + $0x210] sm:$0xff]  ;;  %423 = vmatpush.msra.mxu0 %v152_v53  ;;  %v212_v60 = vld [vmem:[#allocation5 + $0x200] sm:$0xff] }
  0x3b   :  { %v150_v57 = vld [vmem:[#allocation5 + $0x10] sm:$0xff]  ;;  %483 = vmatpush.msra.mxu3 %v248_v54  ;;  %v148_v61 = vld [vmem:[#allocation5] sm:$0xff]  ;;  %464 = vmatpush.msra.mxu2 %v214_v56 }
  0x3c   :  { %v246_v58 = vld [vmem:[#allocation5 + $0x310] sm:$0xff]  ;;  %443 = vmatpush.msra.mxu1 %v184_v55  ;;  %424 = vmatpush.msra.mxu0 %v150_v57  ;;  %v244_v63 = vld [vmem:[#allocation5 + $0x300] sm:$0xff] }
  0x3d   :  { %v182_v59 = vld [vmem:[#allocation5 + $0x110] sm:$0xff]  ;;  %484 = vmatpush.msra.mxu3 %v246_v58  ;;  %465 = vmatpush.msra.mxu2 %v212_v60  ;;  %v368_v2 = vld [vmem:[#allocation5 + $0x6e0] sm:$0xff] }
  0x3e   :  { %v370_v62 = vld [vmem:[#allocation5 + $0x6f0] sm:$0xff]  ;;  %444 = vmatpush.msra.mxu1 %v182_v59  ;;  %425 = vmatpush.msra.mxu0 %v148_v61  ;;  %v180_v3 = vld [vmem:[#allocation5 + $0x100] sm:$0xff] }
  0x3f   :  { %v306_v0 = vld [vmem:[#allocation5 + $0x4f0] sm:$0xff]  ;;  %530 = vmatpush.msrb.mxu2 %v370_v62  ;;  %485 = vmatpush.msra.mxu3 %v244_v63  ;;  %v304_v4 = vld [vmem:[#allocation5 + $0x4e0] sm:$0xff]  ;;  %v243_v62 = vld [vmem:[#allocation5 + $0x2f8] sm:$0xff] }
  0x40   :  { %v402_v1 = vld [vmem:[#allocation5 + $0x7f0] sm:$0xff]  ;;  %490 = vmatpush.msrb.mxu0 %v306_v0  ;;  %v400_v7 = vld [vmem:[#allocation5 + $0x7e0] sm:$0xff]  ;;  %445 = vmatpush.msra.mxu1 %v180_v3  ;;  %v179_v3 = vld [vmem:[#allocation5 + $0xf8] sm:$0xff] }
  0x41   :  { %v338_v5 = vld [vmem:[#allocation5 + $0x5f0] sm:$0xff]  ;;  %550 = vmatpush.msrb.mxu3 %v402_v1  ;;  %531 = vmatpush.msrb.mxu2 %v368_v2  ;;  %v336_v9 = vld [vmem:[#allocation5 + $0x5e0] sm:$0xff]  ;;  %v1470_v2 = vld [vmem:[#allocation2 + $0x18] sm:$0xff] }
  0x42   :  { %v366_v6 = vld [vmem:[#allocation5 + $0x6d0] sm:$0xff]  ;;  %491 = vmatpush.msrb.mxu0 %v304_v4  ;;  %510 = vmatpush.msrb.mxu1 %v338_v5  ;;  %v364_v10 = vld [vmem:[#allocation5 + $0x6c0] sm:$0xff]  ;;  %v241_v4 = vld [vmem:[#allocation5 + $0x2e8] sm:$0xff] }
  0x43   :  { %v302_v8 = vld [vmem:[#allocation5 + $0x4d0] sm:$0xff]  ;;  %532 = vmatpush.msrb.mxu2 %v366_v6  ;;  %551 = vmatpush.msrb.mxu3 %v400_v7  ;;  %v300_v12 = vld [vmem:[#allocation5 + $0x4c0] sm:$0xff]  ;;  %v275_v5 = vld [vmem:[#allocation5 + $0x3f8] sm:$0xff] }
  0x44   :  { %v398_v11 = vld [vmem:[#allocation5 + $0x7d0] sm:$0xff]  ;;  %492 = vmatpush.msrb.mxu0 %v302_v8  ;;  %511 = vmatpush.msrb.mxu1 %v336_v9  ;;  %v396_v15 = vld [vmem:[#allocation5 + $0x7c0] sm:$0xff]  ;;  %v177_v7 = vld [vmem:[#allocation5 + $0xe8] sm:$0xff] }
  0x45   :  { %v334_v13 = vld [vmem:[#allocation5 + $0x5d0] sm:$0xff]  ;;  %533 = vmatpush.msrb.mxu2 %v364_v10  ;;  %552 = vmatpush.msrb.mxu3 %v398_v11  ;;  %v332_v17 = vld [vmem:[#allocation5 + $0x5c0] sm:$0xff]  ;;  %v1474_v8 = vld [vmem:[#allocation2 + $0x8] sm:$0xff] }
  0x46   :  { %v362_v14 = vld [vmem:[#allocation5 + $0x6b0] sm:$0xff]  ;;  %493 = vmatpush.msrb.mxu0 %v300_v12  ;;  %512 = vmatpush.msrb.mxu1 %v334_v13  ;;  %v360_v18 = vld [vmem:[#allocation5 + $0x6a0] sm:$0xff]  ;;  %v239_v9 = vld [vmem:[#allocation5 + $0x2d8] sm:$0xff] }
  0x47   :  { %v298_v16 = vld [vmem:[#allocation5 + $0x4b0] sm:$0xff]  ;;  %534 = vmatpush.msrb.mxu2 %v362_v14  ;;  %553 = vmatpush.msrb.mxu3 %v396_v15  ;;  %v296_v20 = vld [vmem:[#allocation5 + $0x4a0] sm:$0xff]  ;;  %v211_v10 = vld [vmem:[#allocation5 + $0x1f8] sm:$0xff] }
  0x48   :  { %v394_v19 = vld [vmem:[#allocation5 + $0x7b0] sm:$0xff]  ;;  %494 = vmatpush.msrb.mxu0 %v298_v16  ;;  %513 = vmatpush.msrb.mxu1 %v332_v17  ;;  %v392_v23 = vld [vmem:[#allocation5 + $0x7a0] sm:$0xff]  ;;  %v273_v11 = vld [vmem:[#allocation5 + $0x3e8] sm:$0xff] }
  0x49   :  { %v330_v21 = vld [vmem:[#allocation5 + $0x5b0] sm:$0xff]  ;;  %535 = vmatpush.msrb.mxu2 %v360_v18  ;;  %554 = vmatpush.msrb.mxu3 %v394_v19  ;;  %v328_v25 = vld [vmem:[#allocation5 + $0x5a0] sm:$0xff]  ;;  %v175_v12 = vld [vmem:[#allocation5 + $0xd8] sm:$0xff] }
  0x4a   :  { %v358_v22 = vld [vmem:[#allocation5 + $0x690] sm:$0xff]  ;;  %495 = vmatpush.msrb.mxu0 %v296_v20  ;;  %514 = vmatpush.msrb.mxu1 %v330_v21  ;;  %v356_v26 = vld [vmem:[#allocation5 + $0x680] sm:$0xff]  ;;  %v237_v13 = vld [vmem:[#allocation5 + $0x2c8] sm:$0xff] }
  0x4b   :  { %v294_v24 = vld [vmem:[#allocation5 + $0x490] sm:$0xff]  ;;  %536 = vmatpush.msrb.mxu2 %v358_v22  ;;  %555 = vmatpush.msrb.mxu3 %v392_v23  ;;  %v292_v28 = vld [vmem:[#allocation5 + $0x480] sm:$0xff]  ;;  %v209_v14 = vld [vmem:[#allocation5 + $0x1e8] sm:$0xff] }
  0x4c   :  { %v390_v27 = vld [vmem:[#allocation5 + $0x790] sm:$0xff]  ;;  %496 = vmatpush.msrb.mxu0 %v294_v24  ;;  %515 = vmatpush.msrb.mxu1 %v328_v25  ;;  %v388_v31 = vld [vmem:[#allocation5 + $0x780] sm:$0xff]  ;;  %v271_v15 = vld [vmem:[#allocation5 + $0x3d8] sm:$0xff] }
  0x4d   :  { %v326_v29 = vld [vmem:[#allocation5 + $0x590] sm:$0xff]  ;;  %537 = vmatpush.msrb.mxu2 %v356_v26  ;;  %556 = vmatpush.msrb.mxu3 %v390_v27  ;;  %v324_v33 = vld [vmem:[#allocation5 + $0x580] sm:$0xff]  ;;  %v173_v17 = vld [vmem:[#allocation5 + $0xc8] sm:$0xff] }
  0x4e   :  { %v354_v30 = vld [vmem:[#allocation5 + $0x670] sm:$0xff]  ;;  %497 = vmatpush.msrb.mxu0 %v292_v28  ;;  %516 = vmatpush.msrb.mxu1 %v326_v29  ;;  %v352_v34 = vld [vmem:[#allocation5 + $0x660] sm:$0xff]  ;;  %v207_v18 = vld [vmem:[#allocation5 + $0x1d8] sm:$0xff] }
  0x4f   :  { %v290_v32 = vld [vmem:[#allocation5 + $0x470] sm:$0xff]  ;;  %538 = vmatpush.msrb.mxu2 %v354_v30  ;;  %557 = vmatpush.msrb.mxu3 %v388_v31  ;;  %v288_v36 = vld [vmem:[#allocation5 + $0x460] sm:$0xff]  ;;  %v235_v19 = vld [vmem:[#allocation5 + $0x2b8] sm:$0xff] }
  0x50   :  { %v386_v35 = vld [vmem:[#allocation5 + $0x770] sm:$0xff]  ;;  %498 = vmatpush.msrb.mxu0 %v290_v32  ;;  %517 = vmatpush.msrb.mxu1 %v324_v33  ;;  %v384_v39 = vld [vmem:[#allocation5 + $0x760] sm:$0xff]  ;;  %v269_v20 = vld [vmem:[#allocation5 + $0x3c8] sm:$0xff] }
  0x51   :  { %v322_v37 = vld [vmem:[#allocation5 + $0x570] sm:$0xff]  ;;  %539 = vmatpush.msrb.mxu2 %v352_v34  ;;  %558 = vmatpush.msrb.mxu3 %v386_v35  ;;  %v320_v41 = vld [vmem:[#allocation5 + $0x560] sm:$0xff]  ;;  %v1482_v22 = vld [vmem:[#allocation2 + $0x38] sm:$0xff] }
  0x52   :  { %v350_v38 = vld [vmem:[#allocation5 + $0x650] sm:$0xff]  ;;  %499 = vmatpush.msrb.mxu0 %v288_v36  ;;  %518 = vmatpush.msrb.mxu1 %v322_v37  ;;  %v348_v42 = vld [vmem:[#allocation5 + $0x640] sm:$0xff]  ;;  %v171_v23 = vld [vmem:[#allocation5 + $0xb8] sm:$0xff] }
  0x53   :  { %v286_v40 = vld [vmem:[#allocation5 + $0x450] sm:$0xff]  ;;  %540 = vmatpush.msrb.mxu2 %v350_v38  ;;  %559 = vmatpush.msrb.mxu3 %v384_v39  ;;  %v284_v44 = vld [vmem:[#allocation5 + $0x440] sm:$0xff]  ;;  %v205_v24 = vld [vmem:[#allocation5 + $0x1c8] sm:$0xff] }
  0x54   :  { %v382_v43 = vld [vmem:[#allocation5 + $0x750] sm:$0xff]  ;;  %500 = vmatpush.msrb.mxu0 %v286_v40  ;;  %519 = vmatpush.msrb.mxu1 %v320_v41  ;;  %v380_v47 = vld [vmem:[#allocation5 + $0x740] sm:$0xff]  ;;  %v233_v25 = vld [vmem:[#allocation5 + $0x2a8] sm:$0xff] }
  0x55   :  { %v318_v45 = vld [vmem:[#allocation5 + $0x550] sm:$0xff]  ;;  %541 = vmatpush.msrb.mxu2 %v348_v42  ;;  %560 = vmatpush.msrb.mxu3 %v382_v43  ;;  %v316_v49 = vld [vmem:[#allocation5 + $0x540] sm:$0xff]  ;;  %v267_v26 = vld [vmem:[#allocation5 + $0x3b8] sm:$0xff] }
  0x56   :  { %v346_v46 = vld [vmem:[#allocation5 + $0x630] sm:$0xff]  ;;  %501 = vmatpush.msrb.mxu0 %v284_v44  ;;  %520 = vmatpush.msrb.mxu1 %v318_v45  ;;  %v344_v50 = vld [vmem:[#allocation5 + $0x620] sm:$0xff]  ;;  %v1485_v27 = vld [vmem:[#allocation2 + $0x28] sm:$0xff] }
  0x57   :  { %v282_v48 = vld [vmem:[#allocation5 + $0x430] sm:$0xff]  ;;  %542 = vmatpush.msrb.mxu2 %v346_v46  ;;  %561 = vmatpush.msrb.mxu3 %v380_v47  ;;  %v280_v52 = vld [vmem:[#allocation5 + $0x420] sm:$0xff]  ;;  %v169_v28 = vld [vmem:[#allocation5 + $0xa8] sm:$0xff] }
  0x58   :  { %v378_v51 = vld [vmem:[#allocation5 + $0x730] sm:$0xff]  ;;  %502 = vmatpush.msrb.mxu0 %v282_v48  ;;  %521 = vmatpush.msrb.mxu1 %v316_v49  ;;  %v376_v55 = vld [vmem:[#allocation5 + $0x720] sm:$0xff]  ;;  %v203_v29 = vld [vmem:[#allocation5 + $0x1b8] sm:$0xff] }
  0x59   :  { %v314_v53 = vld [vmem:[#allocation5 + $0x530] sm:$0xff]  ;;  %543 = vmatpush.msrb.mxu2 %v344_v50  ;;  %562 = vmatpush.msrb.mxu3 %v378_v51  ;;  %v312_v57 = vld [vmem:[#allocation5 + $0x520] sm:$0xff]  ;;  %v231_v30 = vld [vmem:[#allocation5 + $0x298] sm:$0xff] }
  0x5a   :  { %v342_v54 = vld [vmem:[#allocation5 + $0x610] sm:$0xff]  ;;  %503 = vmatpush.msrb.mxu0 %v280_v52  ;;  %522 = vmatpush.msrb.mxu1 %v314_v53  ;;  %v340_v58 = vld [vmem:[#allocation5 + $0x600] sm:$0xff]  ;;  %v265_v31 = vld [vmem:[#allocation5 + $0x3a8] sm:$0xff] }
  0x5b   :  { %v278_v56 = vld [vmem:[#allocation5 + $0x410] sm:$0xff]  ;;  %544 = vmatpush.msrb.mxu2 %v342_v54  ;;  %563 = vmatpush.msrb.mxu3 %v376_v55  ;;  %v276_v61 = vld [vmem:[#allocation5 + $0x400] sm:$0xff]  ;;  %v167_v32 = vld [vmem:[#allocation5 + $0x98] sm:$0xff] }
  0x5c   :  { %v374_v59 = vld [vmem:[#allocation5 + $0x710] sm:$0xff]  ;;  %504 = vmatpush.msrb.mxu0 %v278_v56  ;;  %523 = vmatpush.msrb.mxu1 %v312_v57  ;;  %v372_v0 = vld [vmem:[#allocation5 + $0x700] sm:$0xff]  ;;  %v201_v33 = vld [vmem:[#allocation5 + $0x1a8] sm:$0xff] }
  0x5d   :  { %v1465_v60 = vld [vmem:[#allocation2 + $0x10] sm:$0xff]  ;;  %545 = vmatpush.msrb.mxu2 %v340_v58  ;;  %564 = vmatpush.msrb.mxu3 %v374_v59  ;;  %v1467_v1 = vld [vmem:[#allocation2] sm:$0xff]  ;;  %v229_v34 = vld [vmem:[#allocation5 + $0x288] sm:$0xff] }
  0x5e   :  { %v310_v63 = vld [vmem:[#allocation5 + $0x510] sm:$0xff]  ;;  %466 = vmatmul.f32.vlgmr.msra.gmra.mxu2 %v1465_v60  ;;  %505 = vmatpush.msrb.mxu0 %v276_v61  ;;  %v308_v6 = vld [vmem:[#allocation5 + $0x500] sm:$0xff]  ;;  %v263_v35 = vld [vmem:[#allocation5 + $0x398] sm:$0xff] }
  0x5f   :  { %610 = vmatpush.msra.mxu2 %v243_v62  ;;  %524 = vmatpush.msrb.mxu1 %v310_v63  ;;  %v1477_v16 = vld [vmem:[#allocation2 + $0x30] sm:$0xff]  ;;  %v1479_v21 = vld [vmem:[#allocation2 + $0x20] sm:$0xff]  ;;  %v165_v36 = vld [vmem:[#allocation5 + $0x88] sm:$0xff] }
  0x60   :  { %565 = vmatpush.msrb.mxu3 %v372_v0  ;;  %426 = vmatmul.f32.vlgmr.msra.gmra.mxu0 %v1467_v1  ;;  %v199_v37 = vld [vmem:[#allocation5 + $0x198] sm:$0xff]  ;;  %v261_v39 = vld [vmem:[#allocation5 + $0x388] sm:$0xff] }
  0x61   :  { %486 = vmatmul.f32.vlgmr.msra.gmra.mxu3 %v1470_v2  ;;  %570 = vmatpush.msra.mxu0 %v179_v3  ;;  %v227_v38 = vld [vmem:[#allocation5 + $0x278] sm:$0xff]  ;;  %v197_v41 = vld [vmem:[#allocation5 + $0x188] sm:$0xff] }
  0x62   :  { %611 = vmatpush.msra.mxu2 %v241_v4  ;;  %630 = vmatpush.msra.mxu3 %v275_v5  ;;  %v163_v40 = vld [vmem:[#allocation5 + $0x78] sm:$0xff]  ;;  %v225_v42 = vld [vmem:[#allocation5 + $0x268] sm:$0xff] }
  0x63   :  { %525 = vmatpush.msrb.mxu1 %v308_v6  ;;  %571 = vmatpush.msra.mxu0 %v177_v7  ;;  %v259_v43 = vld [vmem:[#allocation5 + $0x378] sm:$0xff]  ;;  %v161_v44 = vld [vmem:[#allocation5 + $0x68] sm:$0xff] }
  0x64   :  { %446 = vmatmul.f32.vlgmr.msra.gmra.mxu1 %v1474_v8  ;;  %612 = vmatpush.msra.mxu2 %v239_v9  ;;  %v195_v45 = vld [vmem:[#allocation5 + $0x178] sm:$0xff]  ;;  %v257_v47 = vld [vmem:[#allocation5 + $0x368] sm:$0xff] }
  0x65   :  { %590 = vmatpush.msra.mxu1 %v211_v10  ;;  %631 = vmatpush.msra.mxu3 %v273_v11  ;;  %v223_v46 = vld [vmem:[#allocation5 + $0x258] sm:$0xff]  ;;  %v193_v49 = vld [vmem:[#allocation5 + $0x168] sm:$0xff] }
  0x66   :  { %572 = vmatpush.msra.mxu0 %v175_v12  ;;  %613 = vmatpush.msra.mxu2 %v237_v13  ;;  %v159_v48 = vld [vmem:[#allocation5 + $0x58] sm:$0xff]  ;;  %v221_v50 = vld [vmem:[#allocation5 + $0x248] sm:$0xff] }
  0x67   :  { %591 = vmatpush.msra.mxu1 %v209_v14  ;;  %632 = vmatpush.msra.mxu3 %v271_v15  ;;  %v255_v51 = vld [vmem:[#allocation5 + $0x358] sm:$0xff]  ;;  %v157_v52 = vld [vmem:[#allocation5 + $0x48] sm:$0xff] }
  0x68   :  { %546 = vmatmul.f32.vlgmr.msrb.gmra.mxu2 %v1477_v16  ;;  %573 = vmatpush.msra.mxu0 %v173_v17  ;;  %v191_v53 = vld [vmem:[#allocation5 + $0x158] sm:$0xff]  ;;  %v253_v55 = vld [vmem:[#allocation5 + $0x348] sm:$0xff] }
  0x69   :  { %592 = vmatpush.msra.mxu1 %v207_v18  ;;  %614 = vmatpush.msra.mxu2 %v235_v19  ;;  %v219_v54 = vld [vmem:[#allocation5 + $0x238] sm:$0xff]  ;;  %v189_v57 = vld [vmem:[#allocation5 + $0x148] sm:$0xff] }
  0x6a   :  { %633 = vmatpush.msra.mxu3 %v269_v20  ;;  %506 = vmatmul.f32.vlgmr.msrb.gmra.mxu0 %v1479_v21  ;;  %v155_v56 = vld [vmem:[#allocation5 + $0x38] sm:$0xff]  ;;  %v217_v58 = vld [vmem:[#allocation5 + $0x228] sm:$0xff] }
  0x6b   :  { %566 = vmatmul.f32.vlgmr.msrb.gmra.mxu3 %v1482_v22  ;;  %574 = vmatpush.msra.mxu0 %v171_v23  ;;  %v251_v59 = vld [vmem:[#allocation5 + $0x338] sm:$0xff]  ;;  %v153_v61 = vld [vmem:[#allocation5 + $0x28] sm:$0xff] }
  0x6c   :  { %593 = vmatpush.msra.mxu1 %v205_v24  ;;  %615 = vmatpush.msra.mxu2 %v233_v25  ;;  %v187_v62 = vld [vmem:[#allocation5 + $0x138] sm:$0xff]  ;;  %v249_v0 = vld [vmem:[#allocation5 + $0x328] sm:$0xff] }
  0x6d   :  { %634 = vmatpush.msra.mxu3 %v267_v26  ;;  %526 = vmatmul.f32.vlgmr.msrb.gmra.mxu1 %v1485_v27  ;;  %v215_v63 = vld [vmem:[#allocation5 + $0x218] sm:$0xff]  ;;  %v185_v4 = vld [vmem:[#allocation5 + $0x128] sm:$0xff] }
  0x6e   :  { %575 = vmatpush.msra.mxu0 %v169_v28  ;;  %594 = vmatpush.msra.mxu1 %v203_v29  ;;  %v151_v3 = vld [vmem:[#allocation5 + $0x18] sm:$0xff]  ;;  %v213_v5 = vld [vmem:[#allocation5 + $0x208] sm:$0xff] }
  0x6f   :  { %616 = vmatpush.msra.mxu2 %v231_v30  ;;  %635 = vmatpush.msra.mxu3 %v265_v31  ;;  %v247_v6 = vld [vmem:[#allocation5 + $0x318] sm:$0xff]  ;;  %v149_v9 = vld [vmem:[#allocation5 + $0x8] sm:$0xff] }
  0x70   :  { %576 = vmatpush.msra.mxu0 %v167_v32  ;;  %595 = vmatpush.msra.mxu1 %v201_v33  ;;  %v371_v7 = vld [vmem:[#allocation5 + $0x6f8] sm:$0xff]  ;;  %v245_v11 = vld [vmem:[#allocation5 + $0x308] sm:$0xff] }
  0x71   :  { %617 = vmatpush.msra.mxu2 %v229_v34  ;;  %636 = vmatpush.msra.mxu3 %v263_v35  ;;  %v183_v10 = vld [vmem:[#allocation5 + $0x118] sm:$0xff]  ;;  %v369_v13 = vld [vmem:[#allocation5 + $0x6e8] sm:$0xff] }
  0x72   :  { %577 = vmatpush.msra.mxu0 %v165_v36  ;;  %596 = vmatpush.msra.mxu1 %v199_v37  ;;  %v307_v12 = vld [vmem:[#allocation5 + $0x4f8] sm:$0xff]  ;;  %v181_v15 = vld [vmem:[#allocation5 + $0x108] sm:$0xff] }
  0x73   :  { %618 = vmatpush.msra.mxu2 %v227_v38  ;;  %637 = vmatpush.msra.mxu3 %v261_v39  ;;  %v403_v14 = vld [vmem:[#allocation5 + $0x7f8] sm:$0xff]  ;;  %v305_v17 = vld [vmem:[#allocation5 + $0x4e8] sm:$0xff] }
  0x74   :  { %578 = vmatpush.msra.mxu0 %v163_v40  ;;  %597 = vmatpush.msra.mxu1 %v197_v41  ;;  %v339_v18 = vld [vmem:[#allocation5 + $0x5f8] sm:$0xff]  ;;  %v401_v20 = vld [vmem:[#allocation5 + $0x7e8] sm:$0xff] }
  0x75   :  { %619 = vmatpush.msra.mxu2 %v225_v42  ;;  %638 = vmatpush.msra.mxu3 %v259_v43  ;;  %v367_v19 = vld [vmem:[#allocation5 + $0x6d8] sm:$0xff]  ;;  %v337_v24 = vld [vmem:[#allocation5 + $0x5e8] sm:$0xff] }
  0x76   :  { %579 = vmatpush.msra.mxu0 %v161_v44  ;;  %598 = vmatpush.msra.mxu1 %v195_v45  ;;  %v303_v23 = vld [vmem:[#allocation5 + $0x4d8] sm:$0xff]  ;;  %v365_v25 = vld [vmem:[#allocation5 + $0x6c8] sm:$0xff] }
  0x77   :  { %620 = vmatpush.msra.mxu2 %v223_v46  ;;  %639 = vmatpush.msra.mxu3 %v257_v47  ;;  %v399_v26 = vld [vmem:[#allocation5 + $0x7d8] sm:$0xff]  ;;  %v301_v28 = vld [vmem:[#allocation5 + $0x4c8] sm:$0xff] }
  0x78   :  { %580 = vmatpush.msra.mxu0 %v159_v48  ;;  %599 = vmatpush.msra.mxu1 %v193_v49  ;;  %v335_v29 = vld [vmem:[#allocation5 + $0x5d8] sm:$0xff]  ;;  %v397_v31 = vld [vmem:[#allocation5 + $0x7c8] sm:$0xff] }
  0x79   :  { %621 = vmatpush.msra.mxu2 %v221_v50  ;;  %640 = vmatpush.msra.mxu3 %v255_v51  ;;  %v363_v30 = vld [vmem:[#allocation5 + $0x6b8] sm:$0xff]  ;;  %v333_v33 = vld [vmem:[#allocation5 + $0x5c8] sm:$0xff] }
  0x7a   :  { %581 = vmatpush.msra.mxu0 %v157_v52  ;;  %600 = vmatpush.msra.mxu1 %v191_v53  ;;  %v299_v32 = vld [vmem:[#allocation5 + $0x4b8] sm:$0xff]  ;;  %v361_v34 = vld [vmem:[#allocation5 + $0x6a8] sm:$0xff] }
  0x7b   :  { %622 = vmatpush.msra.mxu2 %v219_v54  ;;  %641 = vmatpush.msra.mxu3 %v253_v55  ;;  %v395_v35 = vld [vmem:[#allocation5 + $0x7b8] sm:$0xff]  ;;  %v297_v36 = vld [vmem:[#allocation5 + $0x4a8] sm:$0xff] }
  0x7c   :  { %582 = vmatpush.msra.mxu0 %v155_v56  ;;  %601 = vmatpush.msra.mxu1 %v189_v57  ;;  %v331_v37 = vld [vmem:[#allocation5 + $0x5b8] sm:$0xff]  ;;  %v393_v39 = vld [vmem:[#allocation5 + $0x7a8] sm:$0xff] }
  0x7d   :  { %623 = vmatpush.msra.mxu2 %v217_v58  ;;  %642 = vmatpush.msra.mxu3 %v251_v59  ;;  %v359_v38 = vld [vmem:[#allocation5 + $0x698] sm:$0xff]  ;;  %v329_v41 = vld [vmem:[#allocation5 + $0x5a8] sm:$0xff] }
  0x7e   :  { %583 = vmatpush.msra.mxu0 %v153_v61  ;;  %602 = vmatpush.msra.mxu1 %v187_v62  ;;  %v295_v40 = vld [vmem:[#allocation5 + $0x498] sm:$0xff]  ;;  %v357_v42 = vld [vmem:[#allocation5 + $0x688] sm:$0xff] }
  0x7f   :  { %624 = vmatpush.msra.mxu2 %v215_v63  ;;  %643 = vmatpush.msra.mxu3 %v249_v0  ;;  %v391_v43 = vld [vmem:[#allocation5 + $0x798] sm:$0xff]  ;;  %v293_v44 = vld [vmem:[#allocation5 + $0x488] sm:$0xff] }
  0x80   :  { %584 = vmatpush.msra.mxu0 %v151_v3  ;;  %603 = vmatpush.msra.mxu1 %v185_v4  ;;  %v327_v45 = vld [vmem:[#allocation5 + $0x598] sm:$0xff]  ;;  %v389_v47 = vld [vmem:[#allocation5 + $0x788] sm:$0xff] }
  0x81   :  { %625 = vmatpush.msra.mxu2 %v213_v5  ;;  %644 = vmatpush.msra.mxu3 %v247_v6  ;;  %v355_v46 = vld [vmem:[#allocation5 + $0x678] sm:$0xff]  ;;  %v325_v49 = vld [vmem:[#allocation5 + $0x588] sm:$0xff] }
  0x82   :  { %585 = vmatpush.msra.mxu0 %v149_v9  ;;  %604 = vmatpush.msra.mxu1 %v183_v10  ;;  %v291_v48 = vld [vmem:[#allocation5 + $0x478] sm:$0xff]  ;;  %v353_v50 = vld [vmem:[#allocation5 + $0x668] sm:$0xff] }
  0x83   :  { %690 = vmatpush.msrb.mxu2 %v371_v7  ;;  %645 = vmatpush.msra.mxu3 %v245_v11  ;;  %v387_v51 = vld [vmem:[#allocation5 + $0x778] sm:$0xff]  ;;  %v289_v52 = vld [vmem:[#allocation5 + $0x468] sm:$0xff] }
  0x84   :  { %650 = vmatpush.msrb.mxu0 %v307_v12  ;;  %605 = vmatpush.msra.mxu1 %v181_v15  ;;  %v323_v53 = vld [vmem:[#allocation5 + $0x578] sm:$0xff]  ;;  %v385_v55 = vld [vmem:[#allocation5 + $0x768] sm:$0xff] }
  0x85   :  { %691 = vmatpush.msrb.mxu2 %v369_v13  ;;  %710 = vmatpush.msrb.mxu3 %v403_v14  ;;  %v351_v54 = vld [vmem:[#allocation5 + $0x658] sm:$0xff]  ;;  %v321_v57 = vld [vmem:[#allocation5 + $0x568] sm:$0xff] }
  0x86   :  { %651 = vmatpush.msrb.mxu0 %v305_v17  ;;  %670 = vmatpush.msrb.mxu1 %v339_v18  ;;  %v287_v56 = vld [vmem:[#allocation5 + $0x458] sm:$0xff]  ;;  %v349_v58 = vld [vmem:[#allocation5 + $0x648] sm:$0xff] }
  0x87   :  { %692 = vmatpush.msrb.mxu2 %v367_v19  ;;  %711 = vmatpush.msrb.mxu3 %v401_v20  ;;  %v383_v59 = vld [vmem:[#allocation5 + $0x758] sm:$0xff]  ;;  %v285_v61 = vld [vmem:[#allocation5 + $0x448] sm:$0xff] }
  0x88   :  { %652 = vmatpush.msrb.mxu0 %v303_v23  ;;  %671 = vmatpush.msrb.mxu1 %v337_v24  ;;  %v319_v62 = vld [vmem:[#allocation5 + $0x558] sm:$0xff]  ;;  %v381_v0 = vld [vmem:[#allocation5 + $0x748] sm:$0xff] }
  0x89   :  { %693 = vmatpush.msrb.mxu2 %v365_v25  ;;  %712 = vmatpush.msrb.mxu3 %v399_v26  ;;  %v347_v63 = vld [vmem:[#allocation5 + $0x638] sm:$0xff]  ;;  %v317_v4 = vld [vmem:[#allocation5 + $0x548] sm:$0xff] }
  0x8a   :  { %653 = vmatpush.msrb.mxu0 %v301_v28  ;;  %672 = vmatpush.msrb.mxu1 %v335_v29  ;;  %v283_v3 = vld [vmem:[#allocation5 + $0x438] sm:$0xff]  ;;  %v345_v5 = vld [vmem:[#allocation5 + $0x628] sm:$0xff] }
  0x8b   :  { %694 = vmatpush.msrb.mxu2 %v363_v30  ;;  %713 = vmatpush.msrb.mxu3 %v397_v31  ;;  %v379_v6 = vld [vmem:[#allocation5 + $0x738] sm:$0xff]  ;;  %v281_v7 = vld [vmem:[#allocation5 + $0x428] sm:$0xff] }
  0x8c   :  { %654 = vmatpush.msrb.mxu0 %v299_v32  ;;  %673 = vmatpush.msrb.mxu1 %v333_v33  ;;  %v315_v9 = vld [vmem:[#allocation5 + $0x538] sm:$0xff]  ;;  %v377_v11 = vld [vmem:[#allocation5 + $0x728] sm:$0xff] }
  0x8d   :  { %695 = vmatpush.msrb.mxu2 %v361_v34  ;;  %714 = vmatpush.msrb.mxu3 %v395_v35  ;;  %v343_v10 = vld [vmem:[#allocation5 + $0x618] sm:$0xff]  ;;  %v313_v12 = vld [vmem:[#allocation5 + $0x528] sm:$0xff] }
  0x8e   :  { %655 = vmatpush.msrb.mxu0 %v297_v36  ;;  %674 = vmatpush.msrb.mxu1 %v331_v37  ;;  %v341_v13 = vld [vmem:[#allocation5 + $0x608] sm:$0xff]  ;;  %v375_v14 = vld [vmem:[#allocation5 + $0x718] sm:$0xff] }
  0x8f   :  { %696 = vmatpush.msrb.mxu2 %v359_v38  ;;  %715 = vmatpush.msrb.mxu3 %v393_v39  ;;  %v373_v15 = vld [vmem:[#allocation5 + $0x708] sm:$0xff] }
  0x90   :  { %656 = vmatpush.msrb.mxu0 %v295_v40  ;;  %675 = vmatpush.msrb.mxu1 %v329_v41  ;;  %v309_v17 = vld [vmem:[#allocation5 + $0x508] sm:$0xff] }
  0x91   :  { %697 = vmatpush.msrb.mxu2 %v357_v42  ;;  %716 = vmatpush.msrb.mxu3 %v391_v43 }
  0x92   :  { %657 = vmatpush.msrb.mxu0 %v293_v44  ;;  %676 = vmatpush.msrb.mxu1 %v327_v45 }
  0x93   :  { %698 = vmatpush.msrb.mxu2 %v355_v46  ;;  %717 = vmatpush.msrb.mxu3 %v389_v47 }
  0x94   :  { %658 = vmatpush.msrb.mxu0 %v291_v48  ;;  %677 = vmatpush.msrb.mxu1 %v325_v49 }
  0x95   :  { %699 = vmatpush.msrb.mxu2 %v353_v50  ;;  %718 = vmatpush.msrb.mxu3 %v387_v51 }
  0x96   :  { %659 = vmatpush.msrb.mxu0 %v289_v52  ;;  %678 = vmatpush.msrb.mxu1 %v323_v53  ;;  %v1373_v52 = vmov 256.0   ;;  %v810_v53 = vld [vmem:[#allocation10 + $0xf0] sm:$0xff] }
  0x97   :  { %700 = vmatpush.msrb.mxu2 %v351_v54  ;;  %719 = vmatpush.msrb.mxu3 %v385_v55  ;;  %1156 = vrcp.f32 %v1373_v52  ;;  %v842_v54 = vld [vmem:[#allocation10 + $0x1f0] sm:$0xff]  ;;  %v811_v55 = vld [vmem:[#allocation10 + $0xf8] sm:$0xff] }
  0x98   :  { %660 = vmatpush.msrb.mxu0 %v287_v56  ;;  %679 = vmatpush.msrb.mxu1 %v321_v57  ;;  %v843_v56 = vld [vmem:[#allocation10 + $0x1f8] sm:$0xff] }
  0x99   :  { %701 = vmatpush.msrb.mxu2 %v349_v58  ;;  %720 = vmatpush.msrb.mxu3 %v383_v59  ;;  %v787_v52 = vld [vmem:[#allocation10 + $0x38] sm:$0xff] }
  0x9a   :  { %626 = vmatmul.f32.vlgmr.msra.gmra.mxu2 %v1465_v60  ;;  %661 = vmatpush.msrb.mxu0 %v285_v61  ;;  %v279_v60 = vld [vmem:[#allocation5 + $0x418] sm:$0xff] }
  0x9b   :  { %680 = vmatpush.msrb.mxu1 %v319_v62  ;;  %702 = vmatpush.msrb.mxu2 %v347_v63 }
  0x9c   :  { %721 = vmatpush.msrb.mxu3 %v381_v0  ;;  %586 = vmatmul.f32.vlgmr.msra.gmra.mxu0 %v1467_v1  ;;  %v277_v1 = vld [vmem:[#allocation5 + $0x408] sm:$0xff] }
  0x9d   :  { %646 = vmatmul.f32.vlgmr.msra.gmra.mxu3 %v1470_v2  ;;  %662 = vmatpush.msrb.mxu0 %v283_v3  ;;  %v311_v2 = vld [vmem:[#allocation5 + $0x518] sm:$0xff]  ;;  %v1157_v57 = vpop.eup %1156 }
  0x9e   :  { %681 = vmatpush.msrb.mxu1 %v317_v4  ;;  %703 = vmatpush.msrb.mxu2 %v345_v5  ;;  %v736_v58 = vmul.f32 256.0, %v1157_v57  ;;  %vm740_vm0 = vweird.f32 %v1157_v57 }
  0x9f   :  { %722 = vmatpush.msrb.mxu3 %v379_v6  ;;  %606 = vmatmul.f32.vlgmr.msra.gmra.mxu1 %v1474_v8  ;;  %v404_v8 = vld [vmem:[#allocation7] sm:$0x3] }
  0xa0   :  { %663 = vmatpush.msrb.mxu0 %v281_v7  ;;  %682 = vmatpush.msrb.mxu1 %v315_v9  ;;  %v406_v19 = vperm.slane %v404_v8, 0  ;;  %v407_v31 = vperm.slane %v404_v8, 1  ;;  %v737_v59 = vsub.f32 1.0, %v736_v58  ;;  %v805_v8 = vld [vmem:[#allocation10 + $0xc8] sm:$0xff]  ;;  %v782_v58 = vld [vmem:[#allocation10 + $0x10] sm:$0xff] }
  0xa1   :  { %704 = vmatpush.msrb.mxu2 %v343_v10  ;;  %723 = vmatpush.msrb.mxu3 %v377_v11  ;;  %v808_v10 = vld [vmem:[#allocation10 + $0xe0] sm:$0xff] }
  0xa2   :  { %664 = vmatpush.msrb.mxu0 %v279_v60  ;;  %683 = vmatpush.msrb.mxu1 %v313_v12  ;;  %v738_v61 = vmul.f32 %v1157_v57, %v737_v59  ;;  %v840_v11 = vld [vmem:[#allocation10 + $0x1e0] sm:$0xff]  ;;  %v809_v60 = vld [vmem:[#allocation10 + $0xe8] sm:$0xff]  ;;  %v814_v59 = vld [vmem:[#allocation10 + $0x110] sm:$0xff] }
  0xa3   :  { %705 = vmatpush.msrb.mxu2 %v341_v13  ;;  %724 = vmatpush.msrb.mxu3 %v375_v14  ;;  %v841_v12 = vld [vmem:[#allocation10 + $0x1e8] sm:$0xff]  ;;  %v806_v13 = vld [vmem:[#allocation10 + $0xd0] sm:$0xff] }
  0xa4   :  { %706 = vmatmul.f32.vlgmr.msrb.gmra.mxu2 %v1477_v16  ;;  %665 = vmatpush.msrb.mxu0 %v277_v1  ;;  %v739_v62 = vadd.f32 %v1157_v57, %v738_v61  ;;  %v838_v14 = vld [vmem:[#allocation10 + $0x1d0] sm:$0xff]  ;;  %v807_v1 = vld [vmem:[#allocation10 + $0xd8] sm:$0xff] }
  0xa5   :  { %684 = vmatpush.msrb.mxu1 %v311_v2  ;;  %725 = vmatpush.msrb.mxu3 %v373_v15  ;;  %v839_v2 = vld [vmem:[#allocation10 + $0x1d8] sm:$0xff]  ;;  %v804_v15 = vld [vmem:[#allocation10 + $0xc0] sm:$0xff] }
  0xa6   :  { %666 = vmatmul.f32.vlgmr.msrb.gmra.mxu0 %v1479_v21  ;;  %726 = vmatmul.f32.vlgmr.msrb.gmra.mxu3 %v1482_v22  ;;  %v1497_v63 = vsel %vm740_vm0, %v1157_v57, %v739_v62  ;;  %v817_v57 = vld [vmem:[#allocation10 + $0x128] sm:$0xff]  ;;  %v783_v61 = vld [vmem:[#allocation10 + $0x18] sm:$0xff] }
  0xa7   :  { %685 = vmatpush.msrb.mxu1 %v309_v17  ;;  %850 = vmatpush.msra.mxu0 %v810_v53  ;;  %v836_v17 = vld [vmem:[#allocation10 + $0x1c0] sm:$0xff]  ;;  %v819_v53 = vld [vmem:[#allocation10 + $0x138] sm:$0xff] }
  0xa8   :  { %686 = vmatmul.f32.vlgmr.msrb.gmra.mxu1 %v1485_v27  ;;  %890 = vmatpush.msra.mxu2 %v811_v55  ;;  %v816_v55 = vld [vmem:[#allocation10 + $0x120] sm:$0xff]  ;;  %v815_v62 = vld [vmem:[#allocation10 + $0x118] sm:$0xff] }
  0xa9   :  { %870 = vmatpush.msra.mxu1 %v842_v54  ;;  %910 = vmatpush.msra.mxu3 %v843_v56  ;;  %v784_v54 = vld [vmem:[#allocation10 + $0x20] sm:$0xff]  ;;  %v785_v56 = vld [vmem:[#allocation10 + $0x28] sm:$0xff] }
  0xaa   :  { %851 = vmatpush.msra.mxu0 %v808_v10  ;;  %891 = vmatpush.msra.mxu2 %v809_v60 }
  0xab   :  { %871 = vmatpush.msra.mxu1 %v840_v11  ;;  %911 = vmatpush.msra.mxu3 %v841_v12 }
  0xac   :  { %852 = vmatpush.msra.mxu0 %v806_v13  ;;  %892 = vmatpush.msra.mxu2 %v807_v1 }
  0xad   :  { %872 = vmatpush.msra.mxu1 %v838_v14  ;;  %912 = vmatpush.msra.mxu3 %v839_v2  ;;  %v730_v2 = vld [vmem:[%s1541_s3] sm:$0x3] }
  0xae   :  { %853 = vmatpush.msra.mxu0 %v804_v15  ;;  %893 = vmatpush.msra.mxu2 %v805_v8  ;;  %v765_v8 = vperm.slane %v730_v2, 0 }
  0xaf   :  { %873 = vmatpush.msra.mxu1 %v836_v17  ;;  %v731_v17 = vld [vmem:[#allocation8] sm:$0x3] }
  0xdd   :  { %v427_v18 = vpop.f32.mrf.mxu0 }
  0xde   :  { %v428_v24 = vadd.f32 %v427_v18, %v406_v19  ;;  %v837_v18 = vld [vmem:[#allocation10 + $0x1c8] sm:$0xff]  ;;  %v802_v19 = vld [vmem:[#allocation10 + $0xb0] sm:$0xff] }
  0xdf   :  { %913 = vmatpush.msra.mxu3 %v837_v18  ;;  %854 = vmatpush.msra.mxu0 %v802_v19  ;;  %v766_v18 = vperm.slane %v730_v2, 1  ;;  %v989_v2 = vld [vmem:[#allocation13 + $0x80] sm:$0xff] }
  0xe1   :  { %v447_v20 = vpop.f32.mrf.mxu1  ;;  %v467_v23 = vpop.f32.mrf.mxu2 }
  0xe2   :  { %v448_v16 = vadd.f32 %v447_v20, %v428_v24  ;;  %v834_v20 = vld [vmem:[#allocation10 + $0x1b0] sm:$0xff]  ;;  %v835_v24 = vld [vmem:[#allocation10 + $0x1b8] sm:$0xff] }
  0xe3   :  { %874 = vmatpush.msra.mxu1 %v834_v20  ;;  %914 = vmatpush.msra.mxu3 %v835_v24  ;;  %v772_v24 = vperm.slane %v731_v17, 0 }
  0xe4   :  { %v487_v25 = vpop.f32.mrf.mxu3  ;;  %v468_v30 = vadd.f32 %v467_v23, %v448_v16  ;;  %v803_v23 = vld [vmem:[#allocation10 + $0xb8] sm:$0xff]  ;;  %v801_v16 = vld [vmem:[#allocation10 + $0xa8] sm:$0xff] }
  0xe5   :  { %894 = vmatpush.msra.mxu2 %v803_v23 }
  0xe6   :  { %v488_v33 = vadd.f32 %v487_v25, %v468_v30  ;;  %v800_v25 = vld [vmem:[#allocation10 + $0xa0] sm:$0xff]  ;;  %v830_v30 = vld [vmem:[#allocation10 + $0x190] sm:$0xff] }
  0xe7   :  { %v507_v26 = vpop.f32.mrf.mxu0  ;;  %855 = vmatpush.msra.mxu0 %v800_v25  ;;  %895 = vmatpush.msra.mxu2 %v801_v16  ;;  %v773_v25 = vperm.slane %v731_v17, 1  ;;  %v990_v17 = vld [vmem:[#allocation13 + $0x88] sm:$0xff] }
  0xe8   :  { %v508_v36 = vadd.f32 %v507_v26, %v488_v33  ;;  %v832_v26 = vld [vmem:[#allocation10 + $0x1a0] sm:$0xff] }
  0xe9   :  { %875 = vmatpush.msra.mxu1 %v832_v26  ;;  %v828_v33 = vld [vmem:[#allocation10 + $0x180] sm:$0xff] }
  0xea   :  { %v527_v28 = vpop.f32.mrf.mxu1 }
  0xeb   :  { %v547_v29 = vpop.f32.mrf.mxu2  ;;  %v528_v40 = vadd.f32 %v527_v28, %v508_v36  ;;  %v833_v28 = vld [vmem:[#allocation10 + $0x1a8] sm:$0xff]  ;;  %876 = vmatpush.msra.mxu1 %v830_v30  ;;  %v795_v36 = vld [vmem:[#allocation10 + $0x78] sm:$0xff] }
  0xec   :  { %915 = vmatpush.msra.mxu3 %v833_v28 }
  0xed   :  { %v548_v44 = vadd.f32 %v547_v29, %v528_v40  ;;  %v798_v29 = vld [vmem:[#allocation10 + $0x90] sm:$0xff]  ;;  %877 = vmatpush.msra.mxu1 %v828_v33  ;;  %v793_v40 = vld [vmem:[#allocation10 + $0x68] sm:$0xff] }
  0xee   :  { %v567_v32 = vpop.f32.mrf.mxu3  ;;  %856 = vmatpush.msra.mxu0 %v798_v29 }
  0xef   :  { %v568_v49 = vadd.f32 %v567_v32, %v548_v44  ;;  %v831_v32 = vld [vmem:[#allocation10 + $0x198] sm:$0xff] }
  0xf0   :  { %916 = vmatpush.msra.mxu3 %v831_v32  ;;  %v791_v44 = vld [vmem:[#allocation10 + $0x58] sm:$0xff] }
  0xf1   :  { %v844_v32 = vld [vmem:[%s1544_s6] sm:$0x3] }
  0xf2   :  { %v847_v33 = vperm.slane %v844_v32, 1 }
 0x119   :  { %v587_v21 = vpop.f32.mrf.mxu0 }
 0x11a   :  { %v588_v22 = vadd.f32 %v587_v21, %v407_v31  ;;  %v799_v31 = vld [vmem:[#allocation10 + $0x98] sm:$0xff]  ;;  %v796_v21 = vld [vmem:[#allocation10 + $0x80] sm:$0xff] }
 0x11b   :  { %896 = vmatpush.msra.mxu2 %v799_v31  ;;  %857 = vmatpush.msra.mxu0 %v796_v21  ;;  %v846_v21 = vperm.slane %v844_v32, 0  ;;  %v981_v32 = vld [vmem:[#allocation13 + $0x40] sm:$0xff] }
 0x11c   :  { %v607_v34 = vpop.f32.mrf.mxu1 }
 0x11d   :  { %v608_v35 = vadd.f32 %v607_v34, %v588_v22  ;;  %v627_v27 = vpop.f32.mrf.mxu2  ;;  %v797_v22 = vld [vmem:[#allocation10 + $0x88] sm:$0xff] }
 0x11e   :  { %v829_v34 = vld [vmem:[#allocation10 + $0x188] sm:$0xff]  ;;  %897 = vmatpush.msra.mxu2 %v797_v22 }
 0x11f   :  { %v628_v37 = vadd.f32 %v627_v27, %v608_v35  ;;  %917 = vmatpush.msra.mxu3 %v829_v34  ;;  %v794_v35 = vld [vmem:[#allocation10 + $0x70] sm:$0xff] }
 0x120   :  { %v647_v38 = vpop.f32.mrf.mxu3  ;;  %v826_v27 = vld [vmem:[#allocation10 + $0x170] sm:$0xff]  ;;  %858 = vmatpush.msra.mxu0 %v794_v35  ;;  %898 = vmatpush.msra.mxu2 %v795_v36 }
 0x121   :  { %v648_v39 = vadd.f32 %v647_v38, %v628_v37  ;;  %878 = vmatpush.msra.mxu1 %v826_v27  ;;  %v827_v37 = vld [vmem:[#allocation10 + $0x178] sm:$0xff]  ;;  %v792_v38 = vld [vmem:[#allocation10 + $0x60] sm:$0xff] }
 0x122   :  { %918 = vmatpush.msra.mxu3 %v827_v37  ;;  %859 = vmatpush.msra.mxu0 %v792_v38 }
 0x123   :  { %v667_v41 = vpop.f32.mrf.mxu0  ;;  %899 = vmatpush.msra.mxu2 %v793_v40  ;;  %v1035_v40 = vld [vmem:[#allocation13 + $0x1f0] sm:$0xff] }
 0x124   :  { %v668_v42 = vadd.f32 %v667_v41, %v648_v39  ;;  %v824_v39 = vld [vmem:[#allocation10 + $0x160] sm:$0xff]  ;;  %v825_v41 = vld [vmem:[#allocation10 + $0x168] sm:$0xff] }
 0x125   :  { %v687_v43 = vpop.f32.mrf.mxu1  ;;  %879 = vmatpush.msra.mxu1 %v824_v39  ;;  %919 = vmatpush.msra.mxu3 %v825_v41  ;;  %v1003_v39 = vld [vmem:[#allocation13 + $0xf0] sm:$0xff]  ;;  %v1004_v41 = vld [vmem:[#allocation13 + $0xf8] sm:$0xff] }
 0x126   :  { %v688_v45 = vadd.f32 %v687_v43, %v668_v42  ;;  %v790_v42 = vld [vmem:[#allocation10 + $0x50] sm:$0xff]  ;;  %900 = vmatpush.msra.mxu2 %v791_v44 }
 0x127   :  { %v707_v46 = vpop.f32.mrf.mxu2  ;;  %v822_v43 = vld [vmem:[#allocation10 + $0x150] sm:$0xff]  ;;  %860 = vmatpush.msra.mxu0 %v790_v42  ;;  %v1036_v42 = vld [vmem:[#allocation13 + $0x1f8] sm:$0xff] }
 0x128   :  { %v708_v47 = vadd.f32 %v707_v46, %v688_v45  ;;  %880 = vmatpush.msra.mxu1 %v822_v43  ;;  %v823_v45 = vld [vmem:[#allocation10 + $0x158] sm:$0xff]  ;;  %v788_v46 = vld [vmem:[#allocation10 + $0x40] sm:$0xff] }
 0x129   :  { %v727_v48 = vpop.f32.mrf.mxu3  ;;  %920 = vmatpush.msra.mxu3 %v823_v45  ;;  %861 = vmatpush.msra.mxu0 %v788_v46 }
 0x12a   :  { %v728_v50 = vadd.f32 %v727_v48, %v708_v47  ;;  %v820_v47 = vld [vmem:[#allocation10 + $0x140] sm:$0xff]  ;;  %v789_v48 = vld [vmem:[#allocation10 + $0x48] sm:$0xff] }
 0x12b   :  { %881 = vmatpush.msra.mxu1 %v820_v47  ;;  %901 = vmatpush.msra.mxu2 %v789_v48 }
 0x12c   :  { %v732_v51 = vadd.f32 %v728_v50, %v568_v49 }
 0x12d   :  { %902 = vmatpush.msra.mxu2 %v787_v52  ;;  %v1002_v52 = vld [vmem:[#allocation13 + $0xe8] sm:$0xff] }
 0x12e   :  { %733 = vadd.xlane.f32.xlu0 %v732_v51  ;;  %v818_v51 = vld [vmem:[#allocation10 + $0x130] sm:$0xff] }
 0x12f   :  { %882 = vmatpush.msra.mxu1 %v818_v51  ;;  %903 = vmatpush.msra.mxu2 %v785_v56  ;;  %v1033_v51 = vld [vmem:[#allocation13 + $0x1e0] sm:$0xff]  ;;  %v1000_v56 = vld [vmem:[#allocation13 + $0xd8] sm:$0xff] }
 0x131   :  { %883 = vmatpush.msra.mxu1 %v816_v55  ;;  %904 = vmatpush.msra.mxu2 %v783_v61  ;;  %v1031_v55 = vld [vmem:[#allocation13 + $0x1d0] sm:$0xff]  ;;  %v998_v61 = vld [vmem:[#allocation13 + $0xc8] sm:$0xff] }
 0x133   :  { %884 = vmatpush.msra.mxu1 %v814_v59  ;;  %v1029_v59 = vld [vmem:[#allocation13 + $0x1c0] sm:$0xff] }
 0x1a1   :  { %v734_v0 = vpop.xlane.xlu0 %733 }
 0x1a2   :  { %v742_v3 = vmul.f32 %v1497_v63, %v734_v0  ;;  %v780_v0 = vld [vmem:[#allocation10] sm:$0xff] }
 0x1a4   :  { %v1500_v4 = vsub.f32 %v568_v49, %v742_v3  ;;  %v1502_v5 = vsub.f32 %v728_v50, %v742_v3  ;;  %v821_v49 = vld [vmem:[#allocation10 + $0x148] sm:$0xff]  ;;  %v786_v50 = vld [vmem:[#allocation10 + $0x30] sm:$0xff]  ;;  %v812_v3 = vld [vmem:[#allocation10 + $0x100] sm:$0xff] }
 0x1a5   :  { %921 = vmatpush.msra.mxu3 %v821_v49  ;;  %862 = vmatpush.msra.mxu0 %v786_v50  ;;  %v1001_v50 = vld [vmem:[#allocation13 + $0xe0] sm:$0xff] }
 0x1a6   :  { %v745_v6 = vmul.f32 %v1500_v4, %v1500_v4  ;;  %v746_v7 = vmul.f32 %v1502_v5, %v1502_v5  ;;  %885 = vmatpush.msra.mxu1 %v812_v3  ;;  %v1027_v3 = vld [vmem:[#allocation13 + $0x1b0] sm:$0xff] }
 0x1a7   :  { %922 = vmatpush.msra.mxu3 %v819_v53  ;;  %863 = vmatpush.msra.mxu0 %v784_v54  ;;  %v1034_v53 = vld [vmem:[#allocation13 + $0x1e8] sm:$0xff]  ;;  %v999_v54 = vld [vmem:[#allocation13 + $0xd0] sm:$0xff] }
 0x1a8   :  { %v747_v9 = vadd.f32 %v746_v7, %v745_v6  ;;  %v781_v6 = vld [vmem:[#allocation10 + $0x8] sm:$0xff]  ;;  %1063 = vmatpush.msrb.mxu1 %v1035_v40  ;;  %v1007_v40 = vld [vmem:[#allocation13 + $0x110] sm:$0xff] }
 0x1a9   :  { %923 = vmatpush.msra.mxu3 %v817_v57  ;;  %864 = vmatpush.msra.mxu0 %v782_v58  ;;  %v813_v7 = vld [vmem:[#allocation10 + $0x108] sm:$0xff]  ;;  %v1032_v57 = vld [vmem:[#allocation13 + $0x1d8] sm:$0xff] }
 0x1aa   :  { %748 = vadd.xlane.f32.xlu0 %v747_v9  ;;  %905 = vmatpush.msra.mxu2 %v781_v6  ;;  %v997_v58 = vld [vmem:[#allocation13 + $0xc0] sm:$0xff]  ;;  %v996_v6 = vld [vmem:[#allocation13 + $0xb8] sm:$0xff] }
 0x1ab   :  { %924 = vmatpush.msra.mxu3 %v815_v62  ;;  %865 = vmatpush.msra.mxu0 %v780_v0  ;;  %v1030_v62 = vld [vmem:[#allocation13 + $0x1c8] sm:$0xff]  ;;  %v995_v0 = vld [vmem:[#allocation13 + $0xb0] sm:$0xff] }
 0x1ac   :  { %1083 = vmatpush.msrb.mxu2 %v1004_v41  ;;  %1064 = vmatpush.msrb.mxu1 %v1033_v51  ;;  %v976_v41 = vld [vmem:[#allocation13 + $0x18] sm:$0xff] }
 0x1ad   :  { %925 = vmatpush.msra.mxu3 %v813_v7  ;;  %1043 = vmatpush.msrb.mxu0 %v1003_v39  ;;  %v1028_v7 = vld [vmem:[#allocation13 + $0x1b8] sm:$0xff]  ;;  %v975_v39 = vld [vmem:[#allocation13 + $0x10] sm:$0xff] }
 0x1ae   :  { %1084 = vmatpush.msrb.mxu2 %v1002_v52  ;;  %1065 = vmatpush.msrb.mxu1 %v1031_v55 }
 0x1af   :  { %1103 = vmatpush.msrb.mxu3 %v1036_v42  ;;  %1044 = vmatpush.msrb.mxu0 %v1001_v50  ;;  %v1008_v42 = vld [vmem:[#allocation13 + $0x118] sm:$0xff] }
 0x1b0   :  { %1085 = vmatpush.msrb.mxu2 %v1000_v56  ;;  %1066 = vmatpush.msrb.mxu1 %v1029_v59  ;;  %v931_v59 = vld [vmem:[#allocation11] sm:$0x3] }
 0x1b1   :  { %1104 = vmatpush.msrb.mxu3 %v1034_v53  ;;  %1045 = vmatpush.msrb.mxu0 %v999_v54 }
 0x1b2   :  { %1086 = vmatpush.msrb.mxu2 %v998_v61  ;;  %1067 = vmatpush.msrb.mxu1 %v1027_v3 }
 0x1b3   :  { %1105 = vmatpush.msrb.mxu3 %v1032_v57  ;;  %1046 = vmatpush.msrb.mxu0 %v997_v58  ;;  %v930_v57 = vld [vmem:[%s1545_s7] sm:$0x3] }
 0x1b4   :  { %1087 = vmatpush.msrb.mxu2 %v996_v6  ;;  %v958_v61 = vperm.slane %v930_v57, 0  ;;  %v965_v6 = vperm.slane %v931_v59, 0 }
 0x1b5   :  { %1106 = vmatpush.msrb.mxu3 %v1030_v62  ;;  %1047 = vmatpush.msrb.mxu0 %v995_v0  ;;  %v959_v62 = vperm.slane %v930_v57, 1 }
 0x1b7   :  { %1107 = vmatpush.msrb.mxu3 %v1028_v7  ;;  %v966_v7 = vperm.slane %v931_v59, 1 }
 0x21d   :  { %v749_v9 = vpop.xlane.xlu0 %748 }
 0x21e   :  { %v750_v10 = vmul.f32 %v749_v9, %v1497_v63  ;;  %v993_v9 = vld [vmem:[#allocation13 + $0xa0] sm:$0xff] }
 0x21f   :  { %1048 = vmatpush.msrb.mxu0 %v993_v9 }
 0x220   :  { %v751_v11 = vadd.f32 1e-05, %v750_v10  ;;  %v1025_v10 = vld [vmem:[#allocation13 + $0x1a0] sm:$0xff] }
 0x221   :  { %1068 = vmatpush.msrb.mxu1 %v1025_v10 }
 0x222   :  { %1158 = vrsqrt.f32 %v751_v11  ;;  %vm758_vm2 = vweird.f32 %v751_v11 }
 0x228   :  { %v1159_v60 = vpop.eup %1158 }
 0x229   :  { %v753_v12 = vmul.f32 %v1159_v60, %v751_v11  ;;  %vm759_vm1 = vweird.f32 %v1159_v60  ;;  %v994_v11 = vld [vmem:[#allocation13 + $0xa8] sm:$0xff] }
 0x22a   :  { %vm760_vm3 = vmor %vm758_vm2, %vm759_vm1  ;;  %1088 = vmatpush.msrb.mxu2 %v994_v11 }
 0x22b   :  { %v754_v13 = vmul.f32 %v1159_v60, %v753_v12  ;;  %v991_v12 = vld [vmem:[#allocation13 + $0x90] sm:$0xff] }
 0x22c   :  { %1049 = vmatpush.msrb.mxu0 %v991_v12 }
 0x22d   :  { %v755_v14 = vmul.f32 0.5, %v754_v13  ;;  %v1023_v13 = vld [vmem:[#allocation13 + $0x190] sm:$0xff] }
 0x22e   :  { %1069 = vmatpush.msrb.mxu1 %v1023_v13  ;;  %1050 = vmatpush.msrb.mxu0 %v989_v2 }
 0x22f   :  { %v756_v1 = vsub.f32 1.5, %v755_v14  ;;  %v992_v14 = vld [vmem:[#allocation13 + $0x98] sm:$0xff] }
 0x230   :  { %1089 = vmatpush.msrb.mxu2 %v992_v14  ;;  %v1037_v14 = vld [vmem:[%s1548_s10] sm:$0x3] }
 0x231   :  { %v757_v15 = vmul.f32 %v1159_v60, %v756_v1  ;;  %v1024_v1 = vld [vmem:[#allocation13 + $0x198] sm:$0xff] }
 0x232   :  { %1090 = vmatpush.msrb.mxu2 %v990_v17  ;;  %v1040_v17 = vperm.slane %v1037_v14, 1 }
 0x233   :  { %v761_v19 = vsel %vm760_vm3, %v1159_v60, %v757_v15  ;;  %v1026_v60 = vld [vmem:[#allocation13 + $0x1a8] sm:$0xff]  ;;  %v1021_v15 = vld [vmem:[#allocation13 + $0x180] sm:$0xff] }
 0x234   :  { %v762_v20 = vmul.f32 %v761_v19, %v1500_v4  ;;  %v763_v23 = vmul.f32 %v761_v19, %v1502_v5  ;;  %1108 = vmatpush.msrb.mxu3 %v1026_v60  ;;  %1070 = vmatpush.msrb.mxu1 %v1021_v15  ;;  %v1019_v19 = vld [vmem:[#allocation13 + $0x170] sm:$0xff] }
 0x236   :  { %v769_v26 = vmul.f32 %v765_v8, %v762_v20  ;;  %v770_v16 = vmul.f32 %v766_v18, %v763_v23  ;;  %1109 = vmatpush.msrb.mxu3 %v1024_v1  ;;  %v1022_v8 = vld [vmem:[#allocation13 + $0x188] sm:$0xff]  ;;  %v987_v18 = vld [vmem:[#allocation13 + $0x70] sm:$0xff]  ;;  %v988_v20 = vld [vmem:[#allocation13 + $0x78] sm:$0xff]  ;;  %1071 = vmatpush.msrb.mxu1 %v1019_v19  ;;  %v1039_v1 = vperm.slane %v1037_v14, 0 }
 0x237   :  { %1051 = vmatpush.msrb.mxu0 %v987_v18  ;;  %v1020_v23 = vld [vmem:[#allocation13 + $0x178] sm:$0xff]  ;;  %1091 = vmatpush.msrb.mxu2 %v988_v20 }
 0x238   :  { %v776_v28 = vadd.f32 %v772_v24, %v769_v26  ;;  %v777_v29 = vadd.f32 %v773_v25, %v770_v16  ;;  %1110 = vmatpush.msrb.mxu3 %v1022_v8  ;;  %v985_v24 = vld [vmem:[#allocation13 + $0x60] sm:$0xff]  ;;  %v986_v26 = vld [vmem:[#allocation13 + $0x68] sm:$0xff] }
 0x239   :  { %v1017_v25 = vld [vmem:[#allocation13 + $0x160] sm:$0xff]  ;;  %1052 = vmatpush.msrb.mxu0 %v985_v24  ;;  %v1018_v16 = vld [vmem:[#allocation13 + $0x168] sm:$0xff]  ;;  %1092 = vmatpush.msrb.mxu2 %v986_v26 }
 0x23a   :  { %v778_v30 = vmax.f32 %v776_v28, 0.0  ;;  %v779_v31 = vmax.f32 %v777_v29, 0.0  ;;  %1111 = vmatpush.msrb.mxu3 %v1020_v23  ;;  %1072 = vmatpush.msrb.mxu1 %v1017_v25  ;;  %v983_v28 = vld [vmem:[#allocation13 + $0x50] sm:$0xff] }
 0x23b   :  { %v1015_v29 = vld [vmem:[#allocation13 + $0x150] sm:$0xff]  ;;  %1053 = vmatpush.msrb.mxu0 %v983_v28 }
 0x23c   :  { %866 = vmatmul.f32.vlgmr.msra.gmra.mxu0 %v778_v30  ;;  %886 = vmatmul.f32.vlgmr.msra.gmra.mxu1 %v779_v31 }
 0x23d   :  { %906 = vmatmul.f32.vlgmr.msra.gmra.mxu2 %v778_v30  ;;  %926 = vmatmul.f32.vlgmr.msra.gmra.mxu3 %v779_v31  ;;  %v984_v30 = vld [vmem:[#allocation13 + $0x58] sm:$0xff] }
 0x23e   :  { %1112 = vmatpush.msrb.mxu3 %v1018_v16  ;;  %1073 = vmatpush.msrb.mxu1 %v1015_v29  ;;  %v1016_v31 = vld [vmem:[#allocation13 + $0x158] sm:$0xff] }
 0x23f   :  { %1093 = vmatpush.msrb.mxu2 %v984_v30  ;;  %1054 = vmatpush.msrb.mxu0 %v981_v32 }
 0x240   :  { %1113 = vmatpush.msrb.mxu3 %v1016_v31 }
 0x2b9   :  { %v867_v4 = vpop.f32.mrf.mxu0  ;;  %v887_v35 = vpop.f32.mrf.mxu1 }
 0x2ba   :  { %v868_v5 = vadd.f32 %v867_v4, %v846_v21  ;;  %v1013_v21 = vld [vmem:[#allocation13 + $0x140] sm:$0xff]  ;;  %v982_v4 = vld [vmem:[#allocation13 + $0x48] sm:$0xff] }
 0x2bb   :  { %1074 = vmatpush.msrb.mxu1 %v1013_v21  ;;  %1094 = vmatpush.msrb.mxu2 %v982_v4 }
 0x2bc   :  { %v888_v36 = vadd.f32 %v887_v35, %v868_v5  ;;  %v979_v5 = vld [vmem:[#allocation13 + $0x30] sm:$0xff]  ;;  %v1012_v35 = vld [vmem:[#allocation13 + $0x138] sm:$0xff] }
 0x2bd   :  { %1055 = vmatpush.msrb.mxu0 %v979_v5 }
 0x2c0   :  { %v907_v22 = vpop.f32.mrf.mxu2  ;;  %v927_v27 = vpop.f32.mrf.mxu3 }
 0x2c1   :  { %v908_v34 = vadd.f32 %v907_v22, %v847_v33  ;;  %v1014_v33 = vld [vmem:[#allocation13 + $0x148] sm:$0xff]  ;;  %v1011_v22 = vld [vmem:[#allocation13 + $0x130] sm:$0xff] }
 0x2c2   :  { %1114 = vmatpush.msrb.mxu3 %v1014_v33  ;;  %1075 = vmatpush.msrb.mxu1 %v1011_v22 }
 0x2c3   :  { %v928_v37 = vadd.f32 %v927_v27, %v908_v34  ;;  %v980_v34 = vld [vmem:[#allocation13 + $0x38] sm:$0xff]  ;;  %v977_v27 = vld [vmem:[#allocation13 + $0x20] sm:$0xff] }
 0x2c4   :  { %1095 = vmatpush.msrb.mxu2 %v980_v34  ;;  %1115 = vmatpush.msrb.mxu3 %v1012_v35 }
 0x2c5   :  { %v932_v38 = vadd.f32 %v928_v37, %v888_v36  ;;  %1056 = vmatpush.msrb.mxu0 %v977_v27 }
 0x2c7   :  { %933 = vadd.xlane.f32.xlu1 %v932_v38  ;;  %v1010_v38 = vld [vmem:[#allocation13 + $0x128] sm:$0xff]  ;;  %1057 = vmatpush.msrb.mxu0 %v975_v39 }
 0x2c8   :  { %1116 = vmatpush.msrb.mxu3 %v1010_v38 }
 0x2ca   :  { %1117 = vmatpush.msrb.mxu3 %v1008_v42 }
 0x33a   :  { %v934_v43 = vpop.xlane.xlu1 %933 }
 0x33b   :  { %v935_v44 = vmul.f32 %v934_v43, %v1497_v63  ;;  %v973_v43 = vld [vmem:[#allocation13] sm:$0xff] }
 0x33c   :  { %1058 = vmatpush.msrb.mxu0 %v973_v43 }
 0x33d   :  { %v1518_v45 = vsub.f32 %v888_v36, %v935_v44  ;;  %v1520_v46 = vsub.f32 %v928_v37, %v935_v44  ;;  %v1009_v36 = vld [vmem:[#allocation13 + $0x120] sm:$0xff]  ;;  %v978_v37 = vld [vmem:[#allocation13 + $0x28] sm:$0xff] }
 0x33e   :  { %1076 = vmatpush.msrb.mxu1 %v1009_v36  ;;  %1096 = vmatpush.msrb.mxu2 %v978_v37  ;;  %v1005_v44 = vld [vmem:[#allocation13 + $0x100] sm:$0xff] }
 0x33f   :  { %v938_v47 = vmul.f32 %v1518_v45, %v1518_v45  ;;  %v939_v48 = vmul.f32 %v1520_v46, %v1520_v46 }
 0x340   :  { %1077 = vmatpush.msrb.mxu1 %v1007_v40  ;;  %1097 = vmatpush.msrb.mxu2 %v976_v41 }
 0x341   :  { %v940_v49 = vadd.f32 %v939_v48, %v938_v47  ;;  %v974_v47 = vld [vmem:[#allocation13 + $0x8] sm:$0xff] }
 0x342   :  { %v1006_v48 = vld [vmem:[#allocation13 + $0x108] sm:$0xff]  ;;  %1078 = vmatpush.msrb.mxu1 %v1005_v44  ;;  %1098 = vmatpush.msrb.mxu2 %v974_v47 }
 0x343   :  { %941 = vadd.xlane.f32.xlu1 %v940_v49  ;;  %1118 = vmatpush.msrb.mxu3 %v1006_v48 }
 0x3b6   :  { %v942_v49 = vpop.xlane.xlu1 %941 }
 0x3b7   :  { %v943_v50 = vmul.f32 %v942_v49, %v1497_v63 }
 0x3b9   :  { %v944_v51 = vadd.f32 1e-05, %v943_v50 }
 0x3bb   :  { %1160 = vrsqrt.f32 %v944_v51  ;;  %vm951_vm5 = vweird.f32 %v944_v51 }
 0x3c1   :  { %v1161_v52 = vpop.eup %1160 }
 0x3c2   :  { %v946_v53 = vmul.f32 %v1161_v52, %v944_v51  ;;  %vm952_vm4 = vweird.f32 %v1161_v52 }
 0x3c3   :  { %vm953_vm6 = vmor %vm951_vm5, %vm952_vm4 }
 0x3c4   :  { %v947_v54 = vmul.f32 %v1161_v52, %v946_v53 }
 0x3c6   :  { %v948_v55 = vmul.f32 0.5, %v947_v54 }
 0x3c8   :  { %v949_v56 = vsub.f32 1.5, %v948_v55 }
 0x3ca   :  { %v950_v58 = vmul.f32 %v1161_v52, %v949_v56 }
 0x3cc   :  { %v954_v0 = vsel %vm953_vm6, %v1161_v52, %v950_v58 }
 0x3cd   :  { %v955_v63 = vmul.f32 %v954_v0, %v1518_v45  ;;  %v956_v3 = vmul.f32 %v954_v0, %v1520_v46 }
 0x3cf   :  { %v962_v9 = vmul.f32 %v958_v61, %v955_v63  ;;  %v963_v10 = vmul.f32 %v959_v62, %v956_v3 }
 0x3d1   :  { %v969_v11 = vadd.f32 %v965_v6, %v962_v9  ;;  %v970_v60 = vadd.f32 %v966_v7, %v963_v10 }
 0x3d3   :  { %v971_v12 = vmax.f32 %v969_v11, 0.0  ;;  %v972_v13 = vmax.f32 %v970_v60, 0.0 }
 0x3d5   :  { %1059 = vmatmul.f32.vlgmr.msrb.gmra.mxu0 %v971_v12  ;;  %1079 = vmatmul.f32.vlgmr.msrb.gmra.mxu1 %v972_v13 }
 0x3d6   :  { %1099 = vmatmul.f32.vlgmr.msrb.gmra.mxu2 %v971_v12  ;;  %1119 = vmatmul.f32.vlgmr.msrb.gmra.mxu3 %v972_v13 }
 0x452   :  { %v1060_v45 = vpop.f32.mrf.mxu0  ;;  %v1080_v46 = vpop.f32.mrf.mxu1 }
 0x453   :  { %v1061_v2 = vadd.f32 %v1060_v45, %v1039_v1 }
 0x455   :  { %v1081_v15 = vadd.f32 %v1080_v46, %v1061_v2 }
 0x457   :  { %1123 = vst [vmem:[#allocation14] sm:$0xff] %v1081_v15 }
 0x459   :  { %v1100_v8 = vpop.f32.mrf.mxu2  ;;  %v1120_v19 = vpop.f32.mrf.mxu3 }
 0x45a   :  { %v1101_v18 = vadd.f32 %v1100_v8, %v1040_v17 }
 0x45c   :  { %v1121_v20 = vadd.f32 %v1120_v19, %v1101_v18 }
 0x45e   :  { %1124 = vst [vmem:[#allocation14 + $0x8] sm:$0xff] %v1121_v20 }
 0x45f   :  { %1135 = dma.vmem_to_hbm [thread:$0]  %s1131_s4, 256, %s1133_s16, [#allocation4]  }
 0x460   :  { %1362 = dma.done.wait [#allocation4], 256  }
 0x461   :  { %1363 = vsyncadd [#allocation4], 4294967040 }
 0x462   :  { %1140 = vsyncpa [#allocation3], 1 }
 0x463   :  { %1141 = vsyncpa [#allocation6], 1 }
 0x464   :  { %1142 = vsyncpa [#allocation9], 1 }
 0x465   :  { %1143 = vsyncpa [#allocation12], 1 }
 0x466   :  { %1144 = vsyncpa [#allocation4], 1 }

</bundles_post_ra>
